<compile_context>
chip_gen: v7x
topology: tpu7x:2x2x1
jax: 0.10.0
libtpu: 0.0.40
codegen_flags: <defaults>
</compile_context>

<pallas_src>
import jax
import jax.numpy as jnp
from jax.experimental import pallas as pl
from jax.experimental.pallas import tpu as pltpu

OUT_SIZE = 256
MEAN = (0.485, 0.456, 0.406)
STD = (0.229, 0.224, 0.225)
INV_STD = tuple(1.0 / s for s in STD)


def _bilinear_matrix(in_size: int, out_size: int) -> jnp.ndarray:
    """Interpolation matrix M (out_size, in_size) s.t. out = M @ in.

    Half-pixel (align_corners=False) convention, same as torchvision Resize /
    F.interpolate(mode='bilinear').  Every row sums to 1, which is what makes
    normalization between the two matmuls exact.
    """
    scale = in_size / out_size
    i = jnp.arange(out_size, dtype=jnp.float32)
    src = (i + 0.5) * scale - 0.5
    src = jnp.clip(src, 0.0, float(in_size - 1))
    i0 = jnp.floor(src).astype(jnp.int32)
    i1 = jnp.minimum(i0 + 1, in_size - 1)
    w1 = src - i0.astype(jnp.float32)
    w0 = 1.0 - w1
    m0 = jax.nn.one_hot(i0, in_size, dtype=jnp.float32) * w0[:, None]
    m1 = jax.nn.one_hot(i1, in_size, dtype=jnp.float32) * w1[:, None]
    return m0 + m1  # (out_size, in_size)


def _make_kernel(H: int, W: int, row_first: bool, fuse_channels: bool,
                 compute_dtype):
    """Build the per-grid-step kernel.

    Refs seen by the kernel (leading size-1 batch dim squeezed away):
      x_ref   : (3, H, W)        input planes (HBM dtype, cast in-register)
      wwt_ref : (W, 256)         column-resize matrix (transposed)
      wh_ref  : (rows, H)        row-resize matrix slice (rows = 256/row_split)
      o_ref   : (3, rows, 256)   output planes
    Normalization (x - mean) * inv_std is applied between the two matmuls on
    the f32 intermediate; exact because bilinear-matrix rows sum to 1.
    """
    dot_dtype = compute_dtype

    def kernel(x_ref, wwt_ref, wh_ref, o_ref):
        if row_first:
            # (rows, H) @ (H, W) -> (rows, W), then @ (W, 256).  Only used when
            # W >= 128 so the intermediate stays lane-dense.
            for c in range(3):
                xc = x_ref[c].astype(dot_dtype)
                t = jnp.dot(wh_ref[...], xc, preferred_element_type=jnp.float32)
                tn = ((t - MEAN[c]) * INV_STD[c]).astype(dot_dtype)
                y = jnp.dot(tn, wwt_ref[...], preferred_element_type=jnp.float32)
                o_ref[c] = y.astype(o_ref.dtype)
        elif fuse_channels:
            # One (3H, W) @ (W, 256) dot for all channels (H % 8 == 0 so the
            # reshape is layout-free), then per-channel row resize.
            xf = x_ref[...].reshape(3 * H, W).astype(dot_dtype)
            t = jnp.dot(xf, wwt_ref[...], preferred_element_type=jnp.float32)
            for c in range(3):
                tc = ((t[c * H:(c + 1) * H, :] - MEAN[c])
                      * INV_STD[c]).astype(dot_dtype)
                y = jnp.dot(wh_ref[...], tc, preferred_element_type=jnp.float32)
                o_ref[c] = y.astype(o_ref.dtype)
        else:
            # Fallback: per-channel column-first.
            for c in range(3):
                xc = x_ref[c].astype(dot_dtype)
                t = jnp.dot(xc, wwt_ref[...], preferred_element_type=jnp.float32)
                tn = ((t - MEAN[c]) * INV_STD[c]).astype(dot_dtype)
                y = jnp.dot(wh_ref[...], tn, preferred_element_type=jnp.float32)
                o_ref[c] = y.astype(o_ref.dtype)

    return kernel


def preprocess(x: jnp.ndarray,
               compute_dtype=jnp.float32,
               out_dtype=jnp.float32,
               row_split=None) -> jnp.ndarray:
    """x: (N, 3, H, W) float in [0, 1] -> (N, 3, 256, 256) out_dtype.

    compute_dtype=jnp.bfloat16 doubles the MXU rate; out_dtype=jnp.bfloat16
    halves the dominant HBM output write.  float32 (default) matches the
    torchvision math up to fp rounding.  The input is NOT cast in the wrapper
    (would cost an extra full HBM read+write); the kernel casts in-register.
    """
    N, C, H, W = x.shape
    assert C == 3, "Preprocess expects 3-channel input"

    row_first = (W < H) and (W >= 128)           # aspect-ratio matmul order
    fuse_channels = (not row_first) and (H % 8 == 0)
    if row_split is None:
        # Batch-1: split output rows 2x so both TensorCores (v7x) get work.
        row_split = 2 if N == 1 else 1
    assert OUT_SIZE % row_split == 0 and (OUT_SIZE // row_split) % 8 == 0
    rows = OUT_SIZE // row_split

    wh = _bilinear_matrix(H, OUT_SIZE).astype(compute_dtype)      # (256, H)
    wwt = _bilinear_matrix(W, OUT_SIZE).T.astype(compute_dtype)   # (W, 256)

    in_itm = jnp.dtype(x.dtype).itemsize
    w_itm = jnp.dtype(compute_dtype).itemsize
    out_itm = jnp.dtype(out_dtype).itemsize
    in_block = C * H * W * in_itm
    out_block = C * rows * OUT_SIZE * out_itm
    w_bytes = (OUT_SIZE * H + W * OUT_SIZE) * w_itm
    scratch = C * (H * OUT_SIZE + rows * OUT_SIZE) * 4      # f32 intermediates
    # Inputs/outputs are double-buffered; weight index_maps are constant so
    # they are DMA'd once.
    vmem_needed = 2 * (in_block + out_block) + 2 * w_bytes + scratch + (2 << 20)
    try:
        vmem_cap = int(getattr(pltpu.get_tpu_info(), "vmem_capacity_bytes",
                               64 << 20))
    except Exception:  # pragma: no cover - conservative fallback
        vmem_cap = 64 << 20                                  # v7x physical VMEM
    vmem_limit = int(min(max(vmem_needed, 16 << 20), int(vmem_cap * 0.85)))

    if row_first:
        flops_img = C * (2 * OUT_SIZE * H * W + 2 * OUT_SIZE * W * OUT_SIZE)
    else:
        flops_img = C * (2 * H * W * OUT_SIZE * row_split
                         + 2 * H * OUT_SIZE * OUT_SIZE)
    flops_img += 2 * C * H * OUT_SIZE                         # affine on interm.
    cost = pl.CostEstimate(
        flops=int(N * flops_img),
        transcendentals=0,
        bytes_accessed=int(N * (in_block + C * OUT_SIZE * OUT_SIZE * out_itm)
                           + w_bytes),
    )

    grid_spec = pltpu.PrefetchScalarGridSpec(
        num_scalar_prefetch=0,
        grid=(N, row_split),
        in_specs=[
            pl.BlockSpec((pl.Squeezed(), C, H, W), lambda n, r: (n, 0, 0, 0)),
            pl.BlockSpec((W, OUT_SIZE), lambda n, r: (0, 0)),
            pl.BlockSpec((rows, H), lambda n, r: (r, 0)),
        ],
        out_specs=pl.BlockSpec((pl.Squeezed(), C, rows, OUT_SIZE),
                               lambda n, r: (n, 0, r, 0)),
    )

    return pl.pallas_call(
        _make_kernel(H, W, row_first, fuse_channels, compute_dtype),
        out_shape=jax.ShapeDtypeStruct((N, C, OUT_SIZE, OUT_SIZE), out_dtype),
        grid_spec=grid_spec,
        compiler_params=pltpu.CompilerParams(
            dimension_semantics=("parallel", "parallel"),
            vmem_limit_bytes=vmem_limit,
        ),
        cost_estimate=cost,
    )(x, wwt, wh)


def _preprocess_ref(x: jnp.ndarray) -> jnp.ndarray:
    """Plain-JAX reference (resize then normalize, f32) for validation."""
    wh = _bilinear_matrix(x.shape[2], OUT_SIZE)
    wwt = _bilinear_matrix(x.shape[3], OUT_SIZE).T
    y = jnp.einsum("oh,nchw,wp->ncop", wh, x.astype(jnp.float32), wwt)
    mean = jnp.asarray(MEAN, dtype=jnp.float32)[None, :, None, None]
    std = jnp.asarray(STD, dtype=jnp.float32)[None, :, None, None]
    return (y - mean) / std


if __name__ == "__main__":
    key = jax.random.PRNGKey(0)
    k1, k2 = jax.random.split(key)

    # 1) Small square batch: exercises the channel-fused column-first path.
    x = jax.random.uniform(k1, (2, 3, 16, 16), dtype=jnp.float32)
    ref = _preprocess_ref(x)
    out = jax.block_until_ready(preprocess(x))
    assert out.shape == (2, 3, 256, 256)
    assert out.dtype == jnp.float32
    assert jnp.allclose(out, ref, atol=1e-4, rtol=1e-4)

    # 2) bf16 fast path: bf16 MXU inputs + bf16 output (halves HBM write).
    out_bf16 = jax.block_until_ready(
        preprocess(x, compute_dtype=jnp.bfloat16, out_dtype=jnp.bfloat16))
    assert out_bf16.dtype == jnp.bfloat16
    assert jnp.allclose(out_bf16.astype(jnp.float32), ref, atol=5e-2, rtol=0)

    # 3) Portrait batch-1 image: exercises row-first matmul order and the
    #    output-row split (grid=(1, 2)) that feeds both v7x TensorCores.
    x2 = jax.random.uniform(k2, (1, 3, 160, 128), dtype=jnp.float32)
    ref2 = _preprocess_ref(x2)
    out2 = jax.block_until_ready(preprocess(x2))
    assert out2.shape == (1, 3, 256, 256)
    assert jnp.allclose(out2, ref2, atol=1e-4, rtol=1e-4)

    print("KERNEL_OK")
</pallas_src>

<mosaic_0001>
module attributes {stable_mosaic.version = 11 : i64} {
  func.func @kernel(%arg0: i32, %arg1: i32, %arg2: memref<1x3x16x16xf32, #tpu.memory_space<vmem>>, %arg3: memref<16x256xf32, #tpu.memory_space<vmem>>, %arg4: memref<256x16xf32, #tpu.memory_space<vmem>>, %arg5: memref<1x3x256x256xf32, #tpu.memory_space<vmem>>) attributes {dimension_semantics = [#tpu.dimension_semantics<parallel>, #tpu.dimension_semantics<parallel>], iteration_bounds = array<i64: 2, 1>, scalar_prefetch = 0 : i64, scratch_operands = 0 : i64, tpu.core_type = #tpu.core_type<tc>, window_params = [{transform_indices = @transform_0, window_bounds = array<i64: 1, 3, 16, 16>}, {pipeline_mode = #tpu.pipeline_mode<synchronous>, transform_indices = @transform_1, window_bounds = array<i64: 16, 256>}, {transform_indices = @transform_2, window_bounds = array<i64: 256, 16>}, {transform_indices = @transform_3, window_bounds = array<i64: 1, 3, 256, 256>}]} {
    %c0 = arith.constant 0 : index
    %c0_0 = arith.constant 0 : index
    %c0_1 = arith.constant 0 : index
    %c0_2 = arith.constant 0 : index
    %0 = vector.load %arg2[%c0, %c0_0, %c0_1, %c0_2] : memref<1x3x16x16xf32, #tpu.memory_space<vmem>>, vector<1x3x16x16xf32>
    %1 = vector.shape_cast %0 : vector<1x3x16x16xf32> to vector<3x16x16xf32>
    %2 = vector.shape_cast %1 : vector<3x16x16xf32> to vector<48x16xf32>
    %c0_3 = arith.constant 0 : index
    %c0_4 = arith.constant 0 : index
    %3 = vector.load %arg3[%c0_3, %c0_4] : memref<16x256xf32, #tpu.memory_space<vmem>>, vector<16x256xf32>
    %cst = arith.constant dense<0.000000e+00> : vector<48x256xf32>
    %4 = tpu.matmul %2, %3, %cst {dimension_numbers = #tpu.dot_dimension_numbers<[1], [0], [0], [1], [0, 0, 1, 1], [], []>} : vector<48x16xf32>, vector<16x256xf32>, vector<48x256xf32> -> vector<48x256xf32>
    %5 = vector.extract_strided_slice %4 {offsets = [0, 0], sizes = [16, 256], strides = [1, 1]} : vector<48x256xf32> to vector<16x256xf32>
    %cst_5 = arith.constant 4.850000e-01 : f32
    %6 = vector.broadcast %cst_5 : f32 to vector<16x256xf32>
    %7 = arith.subf %5, %6 : vector<16x256xf32>
    %cst_6 = arith.constant 4.36681223 : f32
    %8 = vector.broadcast %cst_6 : f32 to vector<16x256xf32>
    %9 = arith.mulf %7, %8 : vector<16x256xf32>
    %c0_7 = arith.constant 0 : index
    %c0_8 = arith.constant 0 : index
    %10 = vector.load %arg4[%c0_7, %c0_8] : memref<256x16xf32, #tpu.memory_space<vmem>>, vector<256x16xf32>
    %cst_9 = arith.constant dense<0.000000e+00> : vector<256x256xf32>
    %11 = tpu.matmul %10, %9, %cst_9 {dimension_numbers = #tpu.dot_dimension_numbers<[1], [0], [0], [1], [0, 0, 1, 1], [], []>} : vector<256x16xf32>, vector<16x256xf32>, vector<256x256xf32> -> vector<256x256xf32>
    %c0_10 = arith.constant 0 : index
    %c0_11 = arith.constant 0 : index
    %c0_12 = arith.constant 0 : index
    %c0_13 = arith.constant 0 : index
    %12 = vector.load %arg5[%c0_10, %c0_11, %c0_12, %c0_13] : memref<1x3x256x256xf32, #tpu.memory_space<vmem>>, vector<1x1x256x256xf32>
    %13 = vector.shape_cast %12 : vector<1x1x256x256xf32> to vector<256x256xf32>
    %14 = vector.shape_cast %11 : vector<256x256xf32> to vector<1x1x256x256xf32>
    tpu.vector_store %arg5[%c0_10, %c0_11, %c0_12, %c0_13], %14 {strides = array<i32>} : memref<1x3x256x256xf32, #tpu.memory_space<vmem>>, vector<1x1x256x256xf32>,
    %15 = vector.extract_strided_slice %4 {offsets = [16, 0], sizes = [16, 256], strides = [1, 1]} : vector<48x256xf32> to vector<16x256xf32>
    %cst_14 = arith.constant 4.560000e-01 : f32
    %16 = vector.broadcast %cst_14 : f32 to vector<16x256xf32>
    %17 = arith.subf %15, %16 : vector<16x256xf32>
    %cst_15 = arith.constant 4.46428585 : f32
    %18 = vector.broadcast %cst_15 : f32 to vector<16x256xf32>
    %19 = arith.mulf %17, %18 : vector<16x256xf32>
    %c0_16 = arith.constant 0 : index
    %c0_17 = arith.constant 0 : index
    %20 = vector.load %arg4[%c0_16, %c0_17] : memref<256x16xf32, #tpu.memory_space<vmem>>, vector<256x16xf32>
    %cst_18 = arith.constant dense<0.000000e+00> : vector<256x256xf32>
    %21 = tpu.matmul %20, %19, %cst_18 {dimension_numbers = #tpu.dot_dimension_numbers<[1], [0], [0], [1], [0, 0, 1, 1], [], []>} : vector<256x16xf32>, vector<16x256xf32>, vector<256x256xf32> -> vector<256x256xf32>
    %c0_19 = arith.constant 0 : index
    %c1 = arith.constant 1 : index
    %c0_20 = arith.constant 0 : index
    %c0_21 = arith.constant 0 : index
    %22 = vector.load %arg5[%c0_19, %c1, %c0_20, %c0_21] : memref<1x3x256x256xf32, #tpu.memory_space<vmem>>, vector<1x1x256x256xf32>
    %23 = vector.shape_cast %22 : vector<1x1x256x256xf32> to vector<256x256xf32>
    %24 = vector.shape_cast %21 : vector<256x256xf32> to vector<1x1x256x256xf32>
    tpu.vector_store %arg5[%c0_19, %c1, %c0_20, %c0_21], %24 {strides = array<i32>} : memref<1x3x256x256xf32, #tpu.memory_space<vmem>>, vector<1x1x256x256xf32>,
    %25 = vector.extract_strided_slice %4 {offsets = [32, 0], sizes = [16, 256], strides = [1, 1]} : vector<48x256xf32> to vector<16x256xf32>
    %cst_22 = arith.constant 4.060000e-01 : f32
    %26 = vector.broadcast %cst_22 : f32 to vector<16x256xf32>
    %27 = arith.subf %25, %26 : vector<16x256xf32>
    %cst_23 = arith.constant 4.44444466 : f32
    %28 = vector.broadcast %cst_23 : f32 to vector<16x256xf32>
    %29 = arith.mulf %27, %28 : vector<16x256xf32>
    %c0_24 = arith.constant 0 : index
    %c0_25 = arith.constant 0 : index
    %30 = vector.load %arg4[%c0_24, %c0_25] : memref<256x16xf32, #tpu.memory_space<vmem>>, vector<256x16xf32>
    %cst_26 = arith.constant dense<0.000000e+00> : vector<256x256xf32>
    %31 = tpu.matmul %30, %29, %cst_26 {dimension_numbers = #tpu.dot_dimension_numbers<[1], [0], [0], [1], [0, 0, 1, 1], [], []>} : vector<256x16xf32>, vector<16x256xf32>, vector<256x256xf32> -> vector<256x256xf32>
    %c0_27 = arith.constant 0 : index
    %c2 = arith.constant 2 : index
    %c0_28 = arith.constant 0 : index
    %c0_29 = arith.constant 0 : index
    %32 = vector.load %arg5[%c0_27, %c2, %c0_28, %c0_29] : memref<1x3x256x256xf32, #tpu.memory_space<vmem>>, vector<1x1x256x256xf32>
    %33 = vector.shape_cast %32 : vector<1x1x256x256xf32> to vector<256x256xf32>
    %34 = vector.shape_cast %31 : vector<256x256xf32> to vector<1x1x256x256xf32>
    tpu.vector_store %arg5[%c0_27, %c2, %c0_28, %c0_29], %34 {strides = array<i32>} : memref<1x3x256x256xf32, #tpu.memory_space<vmem>>, vector<1x1x256x256xf32>,
    return
  }
  func.func @transform_0(%arg0: i32, %arg1: i32) -> (i32, i32, i32, i32) {
    %c0_i32 = arith.constant 0 : i32
    %c0_i32_0 = arith.constant 0 : i32
    %c0_i32_1 = arith.constant 0 : i32
    %c0_i32_2 = arith.constant 0 : i32
    return %arg0, %c0_i32, %c0_i32_0, %c0_i32_1 : i32, i32, i32, i32
  }
  func.func @transform_1(%arg0: i32, %arg1: i32) -> (i32, i32) {
    %c0_i32 = arith.constant 0 : i32
    %c0_i32_0 = arith.constant 0 : i32
    %c0_i32_1 = arith.constant 0 : i32
    return %c0_i32, %c0_i32_0 : i32, i32
  }
  func.func @transform_2(%arg0: i32, %arg1: i32) -> (i32, i32) {
    %c0_i32 = arith.constant 0 : i32
    %c0_i32_0 = arith.constant 0 : i32
    return %arg1, %c0_i32 : i32, i32
  }
  func.func @transform_3(%arg0: i32, %arg1: i32) -> (i32, i32, i32, i32) {
    %c0_i32 = arith.constant 0 : i32
    %c0_i32_0 = arith.constant 0 : i32
    %c0_i32_1 = arith.constant 0 : i32
    return %arg0, %c0_i32, %arg1, %c0_i32_0 : i32, i32, i32, i32
  }
}

</mosaic_0001>

<bundles_post_ra>
// kernel: tpu_custom_call.1
= control target key start
LH: loop header
LB: loop body
LE: loop exit
PB: predicated region body
PF: predicated region fallthrough
CT: control target
= control target key end

     0   :  { %8 = vsyncpa [#allocation3], 0  ;;  %s3280_s0 = inlined_call_operand.hbm [shape: f32[2,3,16,16], index: 0, kind: input, shape index: {}]   ;;  %s3281_s1 = inlined_call_operand.hbm [shape: f32[16,256], index: 1, kind: input, shape index: {}]   ;;  %s3282_s2 = inlined_call_operand.vmem [shape: f32[256,16], index: 2, kind: input, shape index: {}]   ;;  %s3283_s3 = inlined_call_operand.hbm [shape: f32[2,3,256,256], index: 3, kind: output, shape index: {}]  }
   0x1   :  { %10 = vsyncpa [#allocation3 + $0x1], 0 }
   0x2   :  { %11 = vsyncpa [#allocation6], 0 }
   0x3   :  { %12 = vsyncpa [#allocation4], 0 }
   0x4   :  { %14 = vsyncpa [#allocation4 + $0x1], 0  ;;  %s2403_s12 = smov 0   ;;  %s2405_s13 = smov 0  }
   0x5   :  { %s2407_s14 = smov 0   ;;  %s2409_s15 = smov 0  }
   0x6   :  { %s2411_s16 = smov 0   ;;  %s2413_s17 = smov 0  }
   0x7 LB: > { %s1870_s18 = sadd.s32 4294967295, %s2371_s17   ;;  %s1871_s19 = sadd.s32 4294967294, %s2371_s17   ;;  %s2371_s17 = sphi %s2413_s17, %s20_s17   ;;  %s2367_s16 = sphi %s2411_s16, %s3306_s16   ;;  %s2363_s15 = sphi %s2409_s15, %s3305_s15   ;;  %s2359_s14 = sphi %s2407_s14, %s3304_s14   ;;  %s2355_s13 = sphi %s2405_s13, %s3303_s13   ;;  %s2351_s12 = sphi %s2403_s12, %s3302_s12  }
   0x8   : > { %p52_p0 = scmp.ne.s32.totalorder %s2355_s13, %s2351_s12  ;;  %p2437_p1 = scmp.eq.s32.totalorder %s1870_s18, 0 }
   0x9   : > { %p2441_p2 = scmp.eq.s32.totalorder %s1870_s18, 1  ;;  %p131_p3 = scmp.eq.s32.totalorder %s1871_s19, 1 }
   0xa   : > { %s3288_s20 = scalar_select %p2437_p1, 1, 0 }
   0xb   : > { %s3289_s21 = scalar_select %p2441_p2, 1, 0 }
   0xc   : > { %p2447_p4 = por %p2437_p1, %p52_p0  ;;  %p1872_p5 = scmp.ge.s32.totalorder %s2371_s17, 1 }
   0xd   : > { %p2452_p6 = por %p131_p3, %p52_p0  ;;  %p138_p7 = scmp.lt.s32.totalorder %s2371_s17, 3 }
   0xe   : > { %s3290_s22 = scalar_select %p2447_p4, 1, 0 }
   0xf   : > { %s3291_s23 = scalar_select %p2452_p6, 1, 0 }
  0x10   : > { %p2457_p8 = pnand %p1872_p5, %p138_p7  ;;  %s2373_s25 = smov [#allocation5]  }
  0x11   : > { %s150_s26 = sshll.u32 %s2373_s25, 4  ;;  %s32_s28 = sadd.s32 1, %s2367_s16  ;;  %s151_s26 = int_to_ptr.vmem [resolvable:$true] %s150_s26 }
  0x12   : > { %s3292_s24 = scalar_select %p2457_p8, 1, 0 }
  0x13   : > { %p2155_p9 = pneg %p2457_p8  ;;  %s2227_s4 = scalar_lea.hbm %s3281_s1, 512 }
  0x14   : > { %p2228_p12 = scmp.ne.s32.totalorder %s3281_s1, %s2227_s4  ;;  %p2234_p5 = scmp.lt.u32.totalorder %s2227_s4, %s3281_s1 }
  0x15   : > { %p2466_p11 = pnand %p2155_p9, %p2437_p1 }
  0x17   : > { %p2229_p13 = pneg %p2466_p11 }
  0x19   : > { %p2230_p0 = pnand %p2229_p13, %p2228_p12 }
  0x1b   : > { %p2231_p3 = pneg %p2230_p0 }
  0x1d   : > { %p2236_p7 = pnand %p2234_p5, %p2231_p3 }
  0x1f   : > { %2239 = shalt.err (!%p2236_p7)
}
  0x20   : > { %s2240_s9 = scalar_lea.vmem %s151_s26, 512  ;;  %p2248_p1 = scmp.lt.s32.totalorder %s151_s26, %s151_s26 }
  0x21   : > { %p2241_p9 = scmp.ne.s32.totalorder %s151_s26, %s2240_s9  ;;  %p2249_p4 = scmp.lt.s32.totalorder %s2240_s9, %s2240_s9 }
  0x23   : > { %p2243_p10 = pnand %p2241_p9, %p2229_p13  ;;  %p2250_p8 = por %p2249_p4, %p2248_p1 }
  0x25   : > { %p2244_p6 = pneg %p2243_p10 }
  0x27   : > { %p2251_p2 = pnand %p2250_p8, %p2244_p6 }
  0x29   : > { %2254 = shalt.err (!%p2251_p2)
}
  0x2a   : > { %s2374_s10 = smov 256   ;;  %s2375_s11 = smov 16  }
  0x2b   : > { %2158 = dma.hbm_to_vmem [thread:$0]  (!%p2466_p11), %s3281_s1, 512, %s151_s26, [#allocation6], %s2374_s10, %s2374_s10, %s2375_s11  }
  0x2c   : > { %p34_p1 = scmp.ge.s32.totalorder %s32_s28, 2  ;;  %s39_s25 = sadd.s32 1, %s2359_s14 }
  0x2d   : > { %p46_p2 = scmp.ne.s32.totalorder %s2359_s14, %s2355_s13  ;;  %p47_p4 = scmp.eq.s32.totalorder %s2371_s17, 0 }
  0x2e   : > { %s3308_s28 = smov (%p34_p1, %s32_s28), 0  ;;  %p3294_p8 = scmp.ne.s32.totalorder %s3289_s21, 0 }
  0x2f   : > { %p48_p6 = por %p47_p4, %p46_p2  ;;  %s36_s30 = ssub.s32 %s2367_s16, %s3308_s28 }
  0x30   : > { %p2495_p10 = por %p3294_p8, %p46_p2  ;;  %p2168_p12 = scmp.lt.s32.totalorder %s2371_s17, 2 }
  0x31   : > { %p37_p13 = scmp.eq.s32.totalorder %s36_s30, 0  ;;  %s173_s27 = sand.u32 1, %s2359_s14  }
  0x32   : > { %s2142_s4 = smul.u32 48, %s173_s27  ;;  %p2507_p11 = pnand %p2168_p12, %p48_p6 }
  0x33   : > { %s2504_s5 = scalar_select %p37_p13, %s2359_s14, %s39_s25  }
  0x34   : > { %s2143_s26 = smul.u32 768, %s2367_s16  ;;  %s177_s6 = scalar_lea.vmem [#allocation2], %s2142_s4 }
  0x35   : > { %s184_s7 = sshll.u32 %s177_s6, 4  ;;  %s2518_s11 = scalar_lea.sflag [#allocation3], %s173_s27  ;;  %s2516_s7 = int_to_ptr.vmem [resolvable:$true] %s184_s7 }
  0x36   : > { %s2514_s10 = scalar_lea.hbm %s3280_s0, %s2143_s26  ;;  %p2257_p3 = pneg %p2507_p11 }
  0x37   : > { %s2255_s18 = scalar_lea.hbm %s2514_s10, 768  ;;  %s2260_s30 = scalar_lea.hbm %s3280_s0, 1536 }
  0x38   : > { %p2256_p0 = scmp.ne.s32.totalorder %s2514_s10, %s2255_s18  ;;  %p2261_p9 = scmp.lt.u32.totalorder %s2514_s10, %s3280_s0 }
  0x39   : > { %p2262_p1 = scmp.lt.u32.totalorder %s2260_s30, %s2255_s18  ;;  %p2264_p4 = scmp.lt.u32.totalorder %s2255_s18, %s2514_s10 }
  0x3a   : > { %p2258_p5 = pnand %p2257_p3, %p2256_p0 }
  0x3b   : > { %p2263_p2 = por %p2262_p1, %p2261_p9 }
  0x3c   : > { %p2259_p7 = pneg %p2258_p5 }
  0x3d   : > { %p2265_p6 = por %p2264_p4, %p2263_p2 }
  0x3f   : > { %p2266_p8 = pnand %p2265_p6, %p2259_p7 }
  0x41   : > { %2269 = shalt.err (!%p2266_p8)
}
  0x42   : > { %s2270_s27 = scalar_lea.vmem %s2516_s7, 768  ;;  %s2376_s6 = smov [#allocation2]  }
  0x43   : > { %p2271_p12 = scmp.ne.s32.totalorder %s2516_s7, %s2270_s27  ;;  %s2275_s9 = sshll.u32 %s2376_s6, 4  ;;  %s2276_s9 = int_to_ptr.vmem [resolvable:$false] %s2275_s9 }
  0x44   : > { %s2277_s21 = scalar_lea.vmem %s2276_s9, 1536  ;;  %p2278_p5 = scmp.lt.s32.totalorder %s2516_s7, %s2276_s9 }
  0x45   : > { %p2273_p13 = pnand %p2271_p12, %p2257_p3  ;;  %p2279_p9 = scmp.lt.s32.totalorder %s2277_s21, %s2270_s27 }
  0x47   : > { %p2274_p0 = pneg %p2273_p13  ;;  %p2280_p1 = por %p2279_p9, %p2278_p5 }
  0x49   : > { %p2281_p2 = pnand %p2280_p1, %p2274_p0 }
  0x4b   : > { %2284 = shalt.err (!%p2281_p2)
}
  0x4c   : > { %s2377_s18 = smov 128   ;;  %s2378_s19 = smov 8  }
  0x4d   : > { %2162 = dma.hbm_to_vmem [thread:$0]  (!%p2507_p11), %s2514_s10, 768, %s2516_s7, %s2518_s11, %s2377_s18, %s2377_s18, %s2378_s19  }
  0x4e   : > { %p3297_p3 = scmp.ne.s32.totalorder %s3292_s24, 0 }
  0x4f   : > { %s2549_s25 = sand.u32 (!%p3297_p3), 1, %s2355_s13   ;;  %p3298_p7 = scmp.ne.s32.totalorder (!%p3297_p3), %s3290_s22, 0 }
  0x50   : > { %196 = sbr.rel (%p3297_p3) target bundleno = 753 (0x2f1), region = 32  ;;  %s199_s4 = scalar_lea.sflag (!%p3297_p3), [#allocation3], %s2549_s25 }
  0x51   : > { %s2144_s30 = smul.u32 (!%p3297_p3), 48, %s2549_s25 }
  0x53   : > { %s2553_s26 = scalar_lea.vmem (!%p3297_p3), [#allocation2], %s2144_s30 }
  0x57   : > { %2338 = dma.done.wait (%p3298_p7), %s199_s4, 768  }
  0x58   : > { %2340 = vsyncadd (%p3298_p7), %s199_s4, 4294966528  ;;  %p3299_p11 = scmp.ne.s32.totalorder %s3288_s20, 0 }
  0x5a   : > { %2342 = dma.done.wait (%p3299_p11), [#allocation6], 512  }
  0x5b   : > { %2344 = vsyncadd (%p3299_p11), [#allocation6], 4294966784  ;;  %v2379_v0 = vmov 0.0   ;;  %v248_v1 = vld [vmem:[#allocation5 + $0x8] sm:$0xff]  ;;  %v250_v2 = vld [vmem:[#allocation5 + $0x18] sm:$0xff]  ;;  %vm251_vm0 = vcmask 130048  }
  0x5c   : > { %334 = vmatprep.mubr.f32.mxu0 %v2379_v0  ;;  %649 = vmatprep.mubr.f32.mxu1 %v2379_v0  ;;  %v247_v3 = vld [vmem:[#allocation5] sm:$0xff]  ;;  %v2124_v4 = vpack.c.bf16 %v250_v2, %v248_v1  ;;  %v249_v5 = vld [vmem:[#allocation5 + $0x10] sm:$0xff]  ;;  %v242_v8 = vld [vmem:[%s2553_s26 + $0x8] sm:$0xff]  ;;  %s2145_s20 = smul.u32 1536, %s2549_s25  ;;  %s2380_s6 = smov [#allocation7]  }
  0x5d   : > { %v2126_v6 = vpack.c.bf16 %v249_v5, %v247_v3  ;;  %v241_v7 = vld [vmem:[%s2553_s26] sm:$0xff]  ;;  %v243_v9 = vld [vmem:[%s2553_s26 + $0x10] sm:$0xff]  ;;  %v244_v10 = vld [vmem:[%s2553_s26 + $0x18] sm:$0xff]  ;;  %s2146_s24 = smul.u32 24576, %s2363_s15  ;;  %s1745_s15 = scalar_lea.sflag [#allocation4], %s2549_s25 }
  0x5e   : > { %2125 = vmatprep.subr.bf16.mxu0 %v2124_v4  ;;  %v245_v11 = vld [vmem:[%s2553_s26 + $0x20] sm:$0xff]  ;;  %v246_v12 = vld [vmem:[%s2553_s26 + $0x28] sm:$0xff]  ;;  %s3030_s22 = scalar_lea.vmem [#allocation7], %s2145_s20  ;;  %s2289_s9 = sshll.u32 %s2380_s6, 4  ;;  %s2290_s9 = int_to_ptr.vmem [resolvable:$false] %s2289_s9 }
  0x5f   : > { %2127 = vmatpush1.bf16.msra.mxu0 %v2126_v6  ;;  %v2586_v32 = vld [vmem:[%s3282_s2 + $0x68] sm:$0xff]  ;;  %v2591_v36 = vld [vmem:[%s3282_s2] sm:$0xff]  ;;  %v2601_v45 = vld [vmem:[%s3282_s2 + $0x70] sm:$0xff]  ;;  %s1761_s7 = sshll.u32 %s3030_s22, 4  ;;  %s3227_s11 = scalar_lea.hbm %s3283_s3, %s2146_s24  ;;  %s3229_s7 = int_to_ptr.vmem [resolvable:$true] %s1761_s7 }
  0x60   : > { %v2607_v48 = vld [vmem:[%s3282_s2 + $0x8] sm:$0xff]  ;;  %v2615_v53 = vld [vmem:[%s3282_s2 + $0x78] sm:$0xff]  ;;  %v2623_v57 = vld [vmem:[%s3282_s2 + $0x10] sm:$0xff]  ;;  %s2285_s27 = scalar_lea.vmem %s3229_s7, 24576  ;;  %s2291_s21 = scalar_lea.vmem %s2290_s9, 49152 }
  0x61   : > { %v2631_v60 = vld [vmem:[%s3282_s2 + $0x80] sm:$0xff]  ;;  %v2639_v62 = vld [vmem:[%s3282_s2 + $0x18] sm:$0xff]  ;;  %v2647_v63 = vld [vmem:[%s3282_s2 + $0x88] sm:$0xff]  ;;  %p2286_p4 = scmp.ne.s32.totalorder %s3229_s7, %s2285_s27  ;;  %p2292_p12 = scmp.lt.s32.totalorder %s3229_s7, %s2290_s9 }
  0x62   : > { %1879 = vmatmul.mubr.msk.f32.vlgmr.msra.gmra.mrb[0].mxu0 %vm251_vm0, %v241_v7  ;;  %v2655_v1 = vld [vmem:[%s3282_s2 + $0x20] sm:$0xff]  ;;  %v2663_v2 = vld [vmem:[%s3282_s2 + $0x90] sm:$0xff]  ;;  %v2671_v3 = vld [vmem:[%s3282_s2 + $0x28] sm:$0xff]  ;;  %p2293_p13 = scmp.lt.s32.totalorder %s2291_s21, %s2285_s27 }
  0x63   : > { %340 = vmatprep.mubr.f32.mxu0 %v2379_v0  ;;  %v2679_v4 = vld [vmem:[%s3282_s2 + $0x98] sm:$0xff]  ;;  %v2687_v5 = vld [vmem:[%s3282_s2 + $0x30] sm:$0xff]  ;;  %v2695_v6 = vld [vmem:[%s3282_s2 + $0xa0] sm:$0xff]  ;;  %p2287_p6 = pnand %p2286_p4, %p2495_p10 }
  0x64   : > { %v2703_v7 = vld [vmem:[%s3282_s2 + $0x38] sm:$0xff]  ;;  %p2294_p0 = por %p2293_p13, %p2292_p12 }
  0x65   : > { %p2288_p8 = pneg %p2287_p6 }
  0x66   : > { %1880 = vmatmul.mubr.msk.f32.gmra.mrb[2].mxu0 %vm251_vm0, %v242_v8  ;;  %v2711_v8 = vld [vmem:[%s3282_s2 + $0xa8] sm:$0xff] }
  0x67   : > { %346 = vmatprep.mubr.f32.mxu0 %v2379_v0  ;;  %p2295_p5 = pnand %p2294_p0, %p2288_p8 }
  0x6a   : > { %1881 = vmatmul.mubr.msk.f32.gmra.mrb[4].mxu0 %vm251_vm0, %v243_v9  ;;  %v2719_v9 = vld [vmem:[%s3282_s2 + $0x40] sm:$0xff] }
  0x6b   : > { %352 = vmatprep.mubr.f32.mxu0 %v2379_v0 }
  0x6e   : > { %1882 = vmatmul.mubr.msk.f32.gmra.mrb[6].mxu0 %vm251_vm0, %v244_v10  ;;  %v2727_v10 = vld [vmem:[%s3282_s2 + $0xb0] sm:$0xff] }
  0x6f   : > { %358 = vmatprep.mubr.f32.mxu0 %v2379_v0 }
  0x72   : > { %1883 = vmatmul.mubr.msk.f32.gmra.mrb[8].mxu0 %vm251_vm0, %v245_v11  ;;  %v2735_v11 = vld [vmem:[%s3282_s2 + $0x48] sm:$0xff] }
  0x73   : > { %364 = vmatprep.mubr.f32.mxu0 %v2379_v0 }
  0x76   : > { %1884 = vmatmul.mubr.msk.f32.gmra.mrb[10].mxu0 %vm251_vm0, %v246_v12  ;;  %v2743_v12 = vld [vmem:[%s3282_s2 + $0xb8] sm:$0xff] }
  0x77   : > { %571 = vmatprep.mubr.f32.mxu0 %v2379_v0 }
 0x135   : > { %v336_v13 = vpop.f32.mrb[0].mxu0 }
 0x136   : > { %v338_v14 = vpop.f32.mrb[1].mxu0  ;;  %v1885_v15 = vadd.f32 -0.485, %v336_v13  ;;  %v2751_v13 = vld [vmem:[%s3282_s2 + $0x50] sm:$0xff] }
 0x137   : > { %v1886_v16 = vadd.f32 -0.485, %v338_v14  ;;  %v2759_v14 = vld [vmem:[%s3282_s2 + $0xc0] sm:$0xff] }
 0x138   : > { %v375_v21 = vmul.f32 4.366812, %v1885_v15  ;;  %v2767_v15 = vld [vmem:[%s3282_s2 + $0x58] sm:$0xff] }
 0x139   : > { %v342_v17 = vpop.f32.mrb[2].mxu0  ;;  %v376_v23 = vmul.f32 4.366812, %v1886_v16  ;;  %v2775_v16 = vld [vmem:[%s3282_s2 + $0xc8] sm:$0xff] }
 0x13a   : > { %v1887_v18 = vadd.f32 -0.485, %v342_v17  ;;  %v344_v19 = vpop.f32.mrb[3].mxu0  ;;  %v2783_v17 = vld [vmem:[%s3282_s2 + $0x60] sm:$0xff] }
 0x13b   : > { %v1888_v20 = vadd.f32 -0.485, %v344_v19  ;;  %v2802_v19 = vld [vmem:[%s3282_s2 + $0xd8] sm:$0xff] }
 0x13c   : > { %v377_v22 = vmul.f32 4.366812, %v1887_v18  ;;  %v2791_v18 = vld [vmem:[%s3282_s2 + $0xd0] sm:$0xff] }
 0x13d   : > { %v378_v24 = vmul.f32 4.366812, %v1888_v20  ;;  %v348_v25 = vpop.f32.mrb[4].mxu0  ;;  %v2813_v20 = vld [vmem:[%s3282_s2 + $0xe0] sm:$0xff] }
 0x13e   : > { %v2130_v26 = vpack.c.bf16 %v377_v22, %v375_v21  ;;  %v1921_v27 = vadd.f32 -0.456, %v348_v25  ;;  %v350_v28 = vpop.f32.mrb[5].mxu0  ;;  %v2824_v21 = vld [vmem:[%s3282_s2 + $0xe8] sm:$0xff]  ;;  %v2835_v22 = vld [vmem:[%s3282_s2 + $0xf0] sm:$0xff] }
 0x13f   : > { %v2128_v29 = vpack.c.bf16 %v378_v24, %v376_v23  ;;  %v1922_v30 = vadd.f32 -0.456, %v350_v28  ;;  %v2846_v23 = vld [vmem:[%s3282_s2 + $0xf8] sm:$0xff] }
 0x140   : > { %v832_v33 = vmul.f32 4.464286, %v1921_v27 }
 0x141   : > { %v354_v31 = vpop.f32.mrb[6].mxu0  ;;  %2129 = vmatprep.subr.bf16.mxu0 %v2128_v29  ;;  %2140 = vmatprep.subr.bf16.mxu1 %v2128_v29  ;;  %v833_v37 = vmul.f32 4.464286, %v1922_v30 }
 0x142   : > { %v1923_v34 = vadd.f32 -0.456, %v354_v31  ;;  %v356_v35 = vpop.f32.mrb[7].mxu0  ;;  %2131 = vmatpush1.bf16.msra.mxu0 %v2130_v26  ;;  %2141 = vmatpush1.bf16.msra.mxu1 %v2130_v26 }
 0x143   : > { %v1924_v38 = vadd.f32 -0.456, %v356_v35 }
 0x144   : > { %v834_v39 = vmul.f32 4.464286, %v1923_v34 }
 0x145   : > { %v835_v40 = vmul.f32 4.464286, %v1924_v38  ;;  %v360_v41 = vpop.f32.mrb[8].mxu0  ;;  %1889 = vmatmul.mubr.msk.f32.vlgmr.msra.gmra.mrb[12].mxu0 %vm251_vm0, %v2591_v36  ;;  %1902 = vmatmul.mubr.msk.f32.vlgmr.msra.gmra.mrb[0].mxu1 %vm251_vm0, %v2586_v32 }
 0x146   : > { %v2134_v42 = vpack.c.bf16 %v834_v39, %v832_v33  ;;  %v2021_v43 = vadd.f32 -0.406, %v360_v41  ;;  %v362_v44 = vpop.f32.mrb[9].mxu0  ;;  %655 = vmatprep.mubr.f32.mxu1 %v2379_v0  ;;  %577 = vmatprep.mubr.f32.mxu0 %v2379_v0 }
 0x147   : > { %v2132_v46 = vpack.c.bf16 %v835_v40, %v833_v37  ;;  %v2022_v47 = vadd.f32 -0.406, %v362_v44 }
 0x148   : > { %v1290_v50 = vmul.f32 4.4444447, %v2021_v43 }
 0x149   : > { %v366_v49 = vpop.f32.mrb[10].mxu0  ;;  %2133 = vmatprep.subr.bf16.mxu0 %v2132_v46  ;;  %1903 = vmatmul.mubr.msk.f32.gmra.mrb[2].mxu1 %vm251_vm0, %v2601_v45  ;;  %v1291_v54 = vmul.f32 4.4444447, %v2022_v47 }
 0x14a   : > { %v2023_v51 = vadd.f32 -0.406, %v366_v49  ;;  %v368_v52 = vpop.f32.mrb[11].mxu0  ;;  %2135 = vmatpush1.bf16.msra.mxu0 %v2134_v42  ;;  %661 = vmatprep.mubr.f32.mxu1 %v2379_v0 }
 0x14b   : > { %v2024_v55 = vadd.f32 -0.406, %v368_v52  ;;  %1890 = vmatmul.mubr.msk.f32.gmra.mrb[14].mxu0 %vm251_vm0, %v2607_v48 }
 0x14c   : > { %v1292_v56 = vmul.f32 4.4444447, %v2023_v51  ;;  %583 = vmatprep.mubr.f32.mxu0 %v2379_v0 }
 0x14d   : > { %v1293_v58 = vmul.f32 4.4444447, %v2024_v55  ;;  %1904 = vmatmul.mubr.msk.f32.gmra.mrb[4].mxu1 %vm251_vm0, %v2615_v53 }
 0x14e   : > { %v2138_v59 = vpack.c.bf16 %v1292_v56, %v1290_v50  ;;  %667 = vmatprep.mubr.f32.mxu1 %v2379_v0 }
 0x14f   : > { %v2136_v61 = vpack.c.bf16 %v1293_v58, %v1291_v54  ;;  %1891 = vmatmul.mubr.msk.f32.gmra.mrb[16].mxu0 %vm251_vm0, %v2623_v57 }
 0x150   : > { %589 = vmatprep.mubr.f32.mxu0 %v2379_v0 }
 0x151   : > { %2137 = vmatprep.subr.bf16.mxu1 %v2136_v61  ;;  %1905 = vmatmul.mubr.msk.f32.gmra.mrb[6].mxu1 %vm251_vm0, %v2631_v60 }
 0x152   : > { %2139 = vmatpush1.bf16.msra.mxu1 %v2138_v59  ;;  %673 = vmatprep.mubr.f32.mxu1 %v2379_v0 }
 0x153   : > { %1892 = vmatmul.mubr.msk.f32.gmra.mrb[18].mxu0 %vm251_vm0, %v2639_v62 }
 0x154   : > { %595 = vmatprep.mubr.f32.mxu0 %v2379_v0 }
 0x155   : > { %1906 = vmatmul.mubr.msk.f32.gmra.mrb[8].mxu1 %vm251_vm0, %v2647_v63 }
 0x156   : > { %679 = vmatprep.mubr.f32.mxu1 %v2379_v0 }
 0x157   : > { %1893 = vmatmul.mubr.msk.f32.gmra.mrb[20].mxu0 %vm251_vm0, %v2655_v1 }
 0x158   : > { %601 = vmatprep.mubr.f32.mxu0 %v2379_v0 }
 0x159   : > { %1907 = vmatmul.mubr.msk.f32.gmra.mrb[10].mxu1 %vm251_vm0, %v2663_v2 }
 0x15a   : > { %685 = vmatprep.mubr.f32.mxu1 %v2379_v0 }
 0x15b   : > { %1894 = vmatmul.mubr.msk.f32.gmra.mrb[22].mxu0 %vm251_vm0, %v2671_v3 }
 0x15c   : > { %607 = vmatprep.mubr.f32.mxu0 %v2379_v0 }
 0x15d   : > { %1908 = vmatmul.mubr.msk.f32.gmra.mrb[12].mxu1 %vm251_vm0, %v2679_v4 }
 0x15e   : > { %691 = vmatprep.mubr.f32.mxu1 %v2379_v0 }
 0x15f   : > { %1895 = vmatmul.mubr.msk.f32.gmra.mrb[24].mxu0 %vm251_vm0, %v2687_v5 }
 0x160   : > { %613 = vmatprep.mubr.f32.mxu0 %v2379_v0 }
 0x161   : > { %1909 = vmatmul.mubr.msk.f32.gmra.mrb[14].mxu1 %vm251_vm0, %v2695_v6 }
 0x162   : > { %697 = vmatprep.mubr.f32.mxu1 %v2379_v0 }
 0x163   : > { %1896 = vmatmul.mubr.msk.f32.gmra.mrb[26].mxu0 %vm251_vm0, %v2703_v7 }
 0x164   : > { %619 = vmatprep.mubr.f32.mxu0 %v2379_v0 }
 0x165   : > { %1910 = vmatmul.mubr.msk.f32.gmra.mrb[16].mxu1 %vm251_vm0, %v2711_v8 }
 0x166   : > { %703 = vmatprep.mubr.f32.mxu1 %v2379_v0 }
 0x167   : > { %1897 = vmatmul.mubr.msk.f32.gmra.mrb[28].mxu0 %vm251_vm0, %v2719_v9 }
 0x168   : > { %625 = vmatprep.mubr.f32.mxu0 %v2379_v0 }
 0x169   : > { %1911 = vmatmul.mubr.msk.f32.gmra.mrb[18].mxu1 %vm251_vm0, %v2727_v10 }
 0x16a   : > { %709 = vmatprep.mubr.f32.mxu1 %v2379_v0 }
 0x16b   : > { %1898 = vmatmul.mubr.msk.f32.gmra.mrb[30].mxu0 %vm251_vm0, %v2735_v11 }
 0x16c   : > { %631 = vmatprep.mubr.f32.mxu0 %v2379_v0 }
 0x16d   : > { %1912 = vmatmul.mubr.msk.f32.gmra.mrb[20].mxu1 %vm251_vm0, %v2743_v12 }
 0x16e   : > { %715 = vmatprep.mubr.f32.mxu1 %v2379_v0 }
 0x16f   : > { %1899 = vmatmul.mubr.msk.f32.gmra.mrb[32].mxu0 %vm251_vm0, %v2751_v13 }
 0x170   : > { %637 = vmatprep.mubr.f32.mxu0 %v2379_v0 }
 0x171   : > { %1913 = vmatmul.mubr.msk.f32.gmra.mrb[22].mxu1 %vm251_vm0, %v2759_v14 }
 0x172   : > { %721 = vmatprep.mubr.f32.mxu1 %v2379_v0 }
 0x173   : > { %1900 = vmatmul.mubr.msk.f32.gmra.mrb[34].mxu0 %vm251_vm0, %v2767_v15 }
 0x174   : > { %643 = vmatprep.mubr.f32.mxu0 %v2379_v0 }
 0x175   : > { %1914 = vmatmul.mubr.msk.f32.gmra.mrb[24].mxu1 %vm251_vm0, %v2775_v16 }
 0x176   : > { %727 = vmatprep.mubr.f32.mxu1 %v2379_v0 }
 0x177   : > { %1901 = vmatmul.mubr.msk.f32.gmra.mrb[36].mxu0 %vm251_vm0, %v2783_v17 }
 0x178   : > { %1028 = vmatprep.mubr.f32.mxu0 %v2379_v0 }
 0x179   : > { %1915 = vmatmul.mubr.msk.f32.gmra.mrb[26].mxu1 %vm251_vm0, %v2791_v18 }
 0x17a   : > { %733 = vmatprep.mubr.f32.mxu1 %v2379_v0 }
 0x17b   : > { %1925 = vmatmul.mubr.msk.f32.vlgmr.msra.gmra.mrb[38].mxu0 %vm251_vm0, %v2591_v36 }
 0x17c   : > { %1034 = vmatprep.mubr.f32.mxu0 %v2379_v0 }
 0x17d   : > { %1916 = vmatmul.mubr.msk.f32.gmra.mrb[28].mxu1 %vm251_vm0, %v2802_v19 }
 0x17e   : > { %739 = vmatprep.mubr.f32.mxu1 %v2379_v0 }
 0x17f   : > { %1926 = vmatmul.mubr.msk.f32.gmra.mrb[40].mxu0 %vm251_vm0, %v2607_v48 }
 0x180   : > { %1040 = vmatprep.mubr.f32.mxu0 %v2379_v0 }
 0x181   : > { %1917 = vmatmul.mubr.msk.f32.gmra.mrb[30].mxu1 %vm251_vm0, %v2813_v20 }
 0x182   : > { %745 = vmatprep.mubr.f32.mxu1 %v2379_v0 }
 0x183   : > { %1927 = vmatmul.mubr.msk.f32.gmra.mrb[42].mxu0 %vm251_vm0, %v2623_v57 }
 0x184   : > { %1046 = vmatprep.mubr.f32.mxu0 %v2379_v0 }
 0x185   : > { %1918 = vmatmul.mubr.msk.f32.gmra.mrb[32].mxu1 %vm251_vm0, %v2824_v21 }
 0x186   : > { %751 = vmatprep.mubr.f32.mxu1 %v2379_v0 }
 0x187   : > { %1928 = vmatmul.mubr.msk.f32.gmra.mrb[44].mxu0 %vm251_vm0, %v2639_v62 }
 0x188   : > { %1052 = vmatprep.mubr.f32.mxu0 %v2379_v0 }
 0x189   : > { %1919 = vmatmul.mubr.msk.f32.gmra.mrb[34].mxu1 %vm251_vm0, %v2835_v22 }
 0x18a   : > { %757 = vmatprep.mubr.f32.mxu1 %v2379_v0 }
 0x18b   : > { %1929 = vmatmul.mubr.msk.f32.gmra.mrb[46].mxu0 %vm251_vm0, %v2655_v1 }
 0x18c   : > { %1058 = vmatprep.mubr.f32.mxu0 %v2379_v0 }
 0x18d   : > { %1920 = vmatmul.mubr.msk.f32.gmra.mrb[36].mxu1 %vm251_vm0, %v2846_v23 }
 0x18e   : > { %1486 = vmatprep.mubr.f32.mxu1 %v2379_v0 }
 0x18f   : > { %1930 = vmatmul.mubr.msk.f32.gmra.mrb[48].mxu0 %vm251_vm0, %v2671_v3 }
 0x190   : > { %1064 = vmatprep.mubr.f32.mxu0 %v2379_v0 }
 0x191   : > { %2025 = vmatmul.mubr.msk.f32.vlgmr.msra.gmra.mrb[38].mxu1 %vm251_vm0, %v2591_v36 }
 0x192   : > { %1492 = vmatprep.mubr.f32.mxu1 %v2379_v0 }
 0x193   : > { %1931 = vmatmul.mubr.msk.f32.gmra.mrb[50].mxu0 %vm251_vm0, %v2687_v5 }
 0x194   : > { %1070 = vmatprep.mubr.f32.mxu0 %v2379_v0 }
 0x195   : > { %2026 = vmatmul.mubr.msk.f32.gmra.mrb[40].mxu1 %vm251_vm0, %v2607_v48 }
 0x196   : > { %1498 = vmatprep.mubr.f32.mxu1 %v2379_v0 }
 0x197   : > { %1932 = vmatmul.mubr.msk.f32.gmra.mrb[52].mxu0 %vm251_vm0, %v2703_v7 }
 0x198   : > { %1076 = vmatprep.mubr.f32.mxu0 %v2379_v0 }
 0x199   : > { %2027 = vmatmul.mubr.msk.f32.gmra.mrb[42].mxu1 %vm251_vm0, %v2623_v57 }
 0x19a   : > { %1504 = vmatprep.mubr.f32.mxu1 %v2379_v0 }
 0x19b   : > { %1933 = vmatmul.mubr.msk.f32.gmra.mrb[54].mxu0 %vm251_vm0, %v2719_v9 }
 0x19c   : > { %1082 = vmatprep.mubr.f32.mxu0 %v2379_v0 }
 0x19d   : > { %2028 = vmatmul.mubr.msk.f32.gmra.mrb[44].mxu1 %vm251_vm0, %v2639_v62 }
 0x19e   : > { %1510 = vmatprep.mubr.f32.mxu1 %v2379_v0 }
 0x19f   : > { %1934 = vmatmul.mubr.msk.f32.gmra.mrb[56].mxu0 %vm251_vm0, %v2735_v11 }
 0x1a0   : > { %1088 = vmatprep.mubr.f32.mxu0 %v2379_v0 }
 0x1a1   : > { %2029 = vmatmul.mubr.msk.f32.gmra.mrb[46].mxu1 %vm251_vm0, %v2655_v1 }
 0x1a2   : > { %1516 = vmatprep.mubr.f32.mxu1 %v2379_v0 }
 0x1a3   : > { %1935 = vmatmul.mubr.msk.f32.gmra.mrb[58].mxu0 %vm251_vm0, %v2751_v13 }
 0x1a4   : > { %1094 = vmatprep.mubr.f32.mxu0 %v2379_v0 }
 0x1a5   : > { %2030 = vmatmul.mubr.msk.f32.gmra.mrb[48].mxu1 %vm251_vm0, %v2671_v3 }
 0x1a6   : > { %1522 = vmatprep.mubr.f32.mxu1 %v2379_v0 }
 0x1a7   : > { %1936 = vmatmul.mubr.msk.f32.gmra.mrb[60].mxu0 %vm251_vm0, %v2767_v15 }
 0x1a8   : > { %1100 = vmatprep.mubr.f32.mxu0 %v2379_v0 }
 0x1a9   : > { %2031 = vmatmul.mubr.msk.f32.gmra.mrb[50].mxu1 %vm251_vm0, %v2687_v5 }
 0x1aa   : > { %1528 = vmatprep.mubr.f32.mxu1 %v2379_v0 }
 0x1ab   : > { %1937 = vmatmul.mubr.msk.f32.gmra.mrb[62].mxu0 %vm251_vm0, %v2783_v17 }
 0x1ac   : > { %1106 = vmatprep.mubr.f32.mxu0 %v2379_v0 }
 0x1ad   : > { %2032 = vmatmul.mubr.msk.f32.gmra.mrb[52].mxu1 %vm251_vm0, %v2703_v7 }
 0x1ae   : > { %1534 = vmatprep.mubr.f32.mxu1 %v2379_v0 }
 0x1af   : > { %1938 = vmatmul.mubr.msk.f32.gmra.mrb[64].mxu0 %vm251_vm0, %v2586_v32 }
 0x1b0   : > { %1112 = vmatprep.mubr.f32.mxu0 %v2379_v0 }
 0x1b1   : > { %2033 = vmatmul.mubr.msk.f32.gmra.mrb[54].mxu1 %vm251_vm0, %v2719_v9 }
 0x1b2   : > { %1540 = vmatprep.mubr.f32.mxu1 %v2379_v0 }
 0x1b3   : > { %1939 = vmatmul.mubr.msk.f32.gmra.mrb[66].mxu0 %vm251_vm0, %v2601_v45 }
 0x1b4   : > { %1118 = vmatprep.mubr.f32.mxu0 %v2379_v0 }
 0x1b5   : > { %2034 = vmatmul.mubr.msk.f32.gmra.mrb[56].mxu1 %vm251_vm0, %v2735_v11 }
 0x1b6   : > { %1546 = vmatprep.mubr.f32.mxu1 %v2379_v0 }
 0x1b7   : > { %1940 = vmatmul.mubr.msk.f32.gmra.mrb[68].mxu0 %vm251_vm0, %v2615_v53 }
 0x1b8   : > { %1124 = vmatprep.mubr.f32.mxu0 %v2379_v0 }
 0x1b9   : > { %2035 = vmatmul.mubr.msk.f32.gmra.mrb[58].mxu1 %vm251_vm0, %v2751_v13 }
 0x1ba   : > { %1552 = vmatprep.mubr.f32.mxu1 %v2379_v0 }
 0x1bb   : > { %1941 = vmatmul.mubr.msk.f32.gmra.mrb[70].mxu0 %vm251_vm0, %v2631_v60 }
 0x1bc   : > { %1130 = vmatprep.mubr.f32.mxu0 %v2379_v0 }
 0x1bd   : > { %2036 = vmatmul.mubr.msk.f32.gmra.mrb[60].mxu1 %vm251_vm0, %v2767_v15 }
 0x1be   : > { %1558 = vmatprep.mubr.f32.mxu1 %v2379_v0 }
 0x1bf   : > { %1942 = vmatmul.mubr.msk.f32.gmra.mrb[72].mxu0 %vm251_vm0, %v2647_v63 }
 0x1c0   : > { %1136 = vmatprep.mubr.f32.mxu0 %v2379_v0 }
 0x1c1   : > { %2037 = vmatmul.mubr.msk.f32.gmra.mrb[62].mxu1 %vm251_vm0, %v2783_v17 }
 0x1c2   : > { %1564 = vmatprep.mubr.f32.mxu1 %v2379_v0 }
 0x1c3   : > { %1943 = vmatmul.mubr.msk.f32.gmra.mrb[74].mxu0 %vm251_vm0, %v2663_v2 }
 0x1c4   : > { %1142 = vmatprep.mubr.f32.mxu0 %v2379_v0 }
 0x1c5   : > { %2038 = vmatmul.mubr.msk.f32.gmra.mrb[64].mxu1 %vm251_vm0, %v2586_v32 }
 0x1c6   : > { %1570 = vmatprep.mubr.f32.mxu1 %v2379_v0 }
 0x1c7   : > { %1944 = vmatmul.mubr.msk.f32.gmra.mrb[76].mxu0 %vm251_vm0, %v2679_v4 }
 0x1c8   : > { %1148 = vmatprep.mubr.f32.mxu0 %v2379_v0 }
 0x1c9   : > { %2039 = vmatmul.mubr.msk.f32.gmra.mrb[66].mxu1 %vm251_vm0, %v2601_v45 }
 0x1ca   : > { %1576 = vmatprep.mubr.f32.mxu1 %v2379_v0 }
 0x1cb   : > { %1945 = vmatmul.mubr.msk.f32.gmra.mrb[78].mxu0 %vm251_vm0, %v2695_v6 }
 0x1cc   : > { %1154 = vmatprep.mubr.f32.mxu0 %v2379_v0 }
 0x1cd   : > { %2040 = vmatmul.mubr.msk.f32.gmra.mrb[68].mxu1 %vm251_vm0, %v2615_v53 }
 0x1ce   : > { %1582 = vmatprep.mubr.f32.mxu1 %v2379_v0 }
 0x1cf   : > { %1946 = vmatmul.mubr.msk.f32.gmra.mrb[80].mxu0 %vm251_vm0, %v2711_v8 }
 0x1d0   : > { %1160 = vmatprep.mubr.f32.mxu0 %v2379_v0 }
 0x1d1   : > { %2041 = vmatmul.mubr.msk.f32.gmra.mrb[70].mxu1 %vm251_vm0, %v2631_v60 }
 0x1d2   : > { %1588 = vmatprep.mubr.f32.mxu1 %v2379_v0 }
 0x1d3   : > { %1947 = vmatmul.mubr.msk.f32.gmra.mrb[82].mxu0 %vm251_vm0, %v2727_v10 }
 0x1d4   : > { %1166 = vmatprep.mubr.f32.mxu0 %v2379_v0 }
 0x1d5   : > { %2042 = vmatmul.mubr.msk.f32.gmra.mrb[72].mxu1 %vm251_vm0, %v2647_v63 }
 0x1d6   : > { %1594 = vmatprep.mubr.f32.mxu1 %v2379_v0 }
 0x1d7   : > { %1948 = vmatmul.mubr.msk.f32.gmra.mrb[84].mxu0 %vm251_vm0, %v2743_v12 }
 0x1d8   : > { %1172 = vmatprep.mubr.f32.mxu0 %v2379_v0 }
 0x1d9   : > { %2043 = vmatmul.mubr.msk.f32.gmra.mrb[74].mxu1 %vm251_vm0, %v2663_v2 }
 0x1da   : > { %1600 = vmatprep.mubr.f32.mxu1 %v2379_v0 }
 0x1db   : > { %1949 = vmatmul.mubr.msk.f32.gmra.mrb[86].mxu0 %vm251_vm0, %v2759_v14 }
 0x1dc   : > { %1178 = vmatprep.mubr.f32.mxu0 %v2379_v0 }
 0x1dd   : > { %2044 = vmatmul.mubr.msk.f32.gmra.mrb[76].mxu1 %vm251_vm0, %v2679_v4 }
 0x1de   : > { %1606 = vmatprep.mubr.f32.mxu1 %v2379_v0 }
 0x1df   : > { %1950 = vmatmul.mubr.msk.f32.gmra.mrb[88].mxu0 %vm251_vm0, %v2775_v16 }
 0x1e0   : > { %1184 = vmatprep.mubr.f32.mxu0 %v2379_v0 }
 0x1e1   : > { %2045 = vmatmul.mubr.msk.f32.gmra.mrb[78].mxu1 %vm251_vm0, %v2695_v6 }
 0x1e2   : > { %1612 = vmatprep.mubr.f32.mxu1 %v2379_v0 }
 0x1e3   : > { %1951 = vmatmul.mubr.msk.f32.gmra.mrb[90].mxu0 %vm251_vm0, %v2791_v18 }
 0x1e4   : > { %1190 = vmatprep.mubr.f32.mxu0 %v2379_v0 }
 0x1e5   : > { %2046 = vmatmul.mubr.msk.f32.gmra.mrb[80].mxu1 %vm251_vm0, %v2711_v8 }
 0x1e6   : > { %1618 = vmatprep.mubr.f32.mxu1 %v2379_v0 }
 0x1e7   : > { %1952 = vmatmul.mubr.msk.f32.gmra.mrb[92].mxu0 %vm251_vm0, %v2802_v19 }
 0x1e8   : > { %1196 = vmatprep.mubr.f32.mxu0 %v2379_v0 }
 0x1e9   : > { %2047 = vmatmul.mubr.msk.f32.gmra.mrb[82].mxu1 %vm251_vm0, %v2727_v10 }
 0x1ea   : > { %1624 = vmatprep.mubr.f32.mxu1 %v2379_v0 }
 0x1eb   : > { %1953 = vmatmul.mubr.msk.f32.gmra.mrb[94].mxu0 %vm251_vm0, %v2813_v20 }
 0x1ec   : > { %1202 = vmatprep.mubr.f32.mxu0 %v2379_v0 }
 0x1ed   : > { %2048 = vmatmul.mubr.msk.f32.gmra.mrb[84].mxu1 %vm251_vm0, %v2743_v12 }
 0x1ee   : > { %1630 = vmatprep.mubr.f32.mxu1 %v2379_v0 }
 0x1ef   : > { %1954 = vmatmul.mubr.msk.f32.gmra.mrb[96].mxu0 %vm251_vm0, %v2824_v21 }
 0x1f0   : > { %1208 = vmatprep.mubr.f32.mxu0 %v2379_v0 }
 0x1f1   : > { %2049 = vmatmul.mubr.msk.f32.gmra.mrb[86].mxu1 %vm251_vm0, %v2759_v14 }
 0x1f2   : > { %1636 = vmatprep.mubr.f32.mxu1 %v2379_v0 }
 0x1f3   : > { %1955 = vmatmul.mubr.msk.f32.gmra.mrb[98].mxu0 %vm251_vm0, %v2835_v22 }
 0x1f4   : > { %1214 = vmatprep.mubr.f32.mxu0 %v2379_v0 }
 0x1f5   : > { %2050 = vmatmul.mubr.msk.f32.gmra.mrb[88].mxu1 %vm251_vm0, %v2775_v16 }
 0x1f6   : > { %1642 = vmatprep.mubr.f32.mxu1 %v2379_v0 }
 0x1f7   : > { %1956 = vmatmul.mubr.msk.f32.gmra.mrb[100].mxu0 %vm251_vm0, %v2846_v23 }
 0x1f9   : > { %2051 = vmatmul.mubr.msk.f32.gmra.mrb[90].mxu1 %vm251_vm0, %v2791_v18 }
 0x1fa   : > { %1648 = vmatprep.mubr.f32.mxu1 %v2379_v0 }
 0x1fd   : > { %2052 = vmatmul.mubr.msk.f32.gmra.mrb[92].mxu1 %vm251_vm0, %v2802_v19 }
 0x1fe   : > { %1654 = vmatprep.mubr.f32.mxu1 %v2379_v0 }
 0x201   : > { %2053 = vmatmul.mubr.msk.f32.gmra.mrb[94].mxu1 %vm251_vm0, %v2813_v20 }
 0x202   : > { %1660 = vmatprep.mubr.f32.mxu1 %v2379_v0 }
 0x205   : > { %2054 = vmatmul.mubr.msk.f32.gmra.mrb[96].mxu1 %vm251_vm0, %v2824_v21 }
 0x206   : > { %1666 = vmatprep.mubr.f32.mxu1 %v2379_v0 }
 0x209   : > { %2055 = vmatmul.mubr.msk.f32.gmra.mrb[98].mxu1 %vm251_vm0, %v2835_v22 }
 0x20a   : > { %1672 = vmatprep.mubr.f32.mxu1 %v2379_v0 }
 0x20d   : > { %2056 = vmatmul.mubr.msk.f32.gmra.mrb[100].mxu1 %vm251_vm0, %v2846_v23 }
 0x218   : > { %v651_v24 = vpop.f32.mrb[0].mxu1  ;;  %v573_v25 = vpop.f32.mrb[12].mxu0 }
 0x219   : > { %790 = vst [vmem:[%s3030_s22 + $0xd0] sm:$0xff] %v651_v24  ;;  %v653_v26 = vpop.f32.mrb[1].mxu1  ;;  %764 = vst [vmem:[%s3030_s22] sm:$0xff] %v573_v25  ;;  %v575_v0 = vpop.f32.mrb[13].mxu0 }
 0x21a   : > { %791 = vst [vmem:[%s3030_s22 + $0xd8] sm:$0xff] %v653_v26  ;;  %765 = vst [vmem:[%s3030_s22 + $0x8] sm:$0xff] %v575_v0 }
 0x21c   : > { %v657_v27 = vpop.f32.mrb[2].mxu1 }
 0x21d   : > { %792 = vst [vmem:[%s3030_s22 + $0xe0] sm:$0xff] %v657_v27  ;;  %v659_v28 = vpop.f32.mrb[3].mxu1 }
 0x21e   : > { %793 = vst [vmem:[%s3030_s22 + $0xe8] sm:$0xff] %v659_v28  ;;  %v579_v29 = vpop.f32.mrb[14].mxu0 }
 0x21f   : > { %766 = vst [vmem:[%s3030_s22 + $0x10] sm:$0xff] %v579_v29  ;;  %v581_v30 = vpop.f32.mrb[15].mxu0 }
 0x220   : > { %v663_v31 = vpop.f32.mrb[4].mxu1  ;;  %767 = vst [vmem:[%s3030_s22 + $0x18] sm:$0xff] %v581_v30 }
 0x221   : > { %794 = vst [vmem:[%s3030_s22 + $0xf0] sm:$0xff] %v663_v31  ;;  %v665_v32 = vpop.f32.mrb[5].mxu1 }
 0x222   : > { %795 = vst [vmem:[%s3030_s22 + $0xf8] sm:$0xff] %v665_v32  ;;  %v585_v33 = vpop.f32.mrb[16].mxu0 }
 0x223   : > { %768 = vst [vmem:[%s3030_s22 + $0x20] sm:$0xff] %v585_v33  ;;  %v587_v34 = vpop.f32.mrb[17].mxu0 }
 0x224   : > { %v669_v35 = vpop.f32.mrb[6].mxu1  ;;  %769 = vst [vmem:[%s3030_s22 + $0x28] sm:$0xff] %v587_v34 }
 0x225   : > { %796 = vst [vmem:[%s3030_s22 + $0x100] sm:$0xff] %v669_v35  ;;  %v671_v36 = vpop.f32.mrb[7].mxu1 }
 0x226   : > { %797 = vst [vmem:[%s3030_s22 + $0x108] sm:$0xff] %v671_v36  ;;  %v591_v37 = vpop.f32.mrb[18].mxu0 }
 0x227   : > { %770 = vst [vmem:[%s3030_s22 + $0x30] sm:$0xff] %v591_v37  ;;  %v593_v38 = vpop.f32.mrb[19].mxu0 }
 0x228   : > { %v675_v39 = vpop.f32.mrb[8].mxu1  ;;  %771 = vst [vmem:[%s3030_s22 + $0x38] sm:$0xff] %v593_v38 }
 0x229   : > { %798 = vst [vmem:[%s3030_s22 + $0x110] sm:$0xff] %v675_v39  ;;  %v677_v40 = vpop.f32.mrb[9].mxu1 }
 0x22a   : > { %799 = vst [vmem:[%s3030_s22 + $0x118] sm:$0xff] %v677_v40  ;;  %v597_v41 = vpop.f32.mrb[20].mxu0 }
 0x22b   : > { %772 = vst [vmem:[%s3030_s22 + $0x40] sm:$0xff] %v597_v41  ;;  %v599_v42 = vpop.f32.mrb[21].mxu0 }
 0x22c   : > { %v681_v43 = vpop.f32.mrb[10].mxu1  ;;  %773 = vst [vmem:[%s3030_s22 + $0x48] sm:$0xff] %v599_v42 }
 0x22d   : > { %800 = vst [vmem:[%s3030_s22 + $0x120] sm:$0xff] %v681_v43  ;;  %v683_v44 = vpop.f32.mrb[11].mxu1 }
 0x22e   : > { %801 = vst [vmem:[%s3030_s22 + $0x128] sm:$0xff] %v683_v44  ;;  %v603_v45 = vpop.f32.mrb[22].mxu0 }
 0x22f   : > { %774 = vst [vmem:[%s3030_s22 + $0x50] sm:$0xff] %v603_v45  ;;  %v605_v46 = vpop.f32.mrb[23].mxu0 }
 0x230   : > { %v687_v47 = vpop.f32.mrb[12].mxu1  ;;  %775 = vst [vmem:[%s3030_s22 + $0x58] sm:$0xff] %v605_v46 }
 0x231   : > { %802 = vst [vmem:[%s3030_s22 + $0x130] sm:$0xff] %v687_v47  ;;  %v689_v48 = vpop.f32.mrb[13].mxu1 }
 0x232   : > { %803 = vst [vmem:[%s3030_s22 + $0x138] sm:$0xff] %v689_v48  ;;  %v609_v49 = vpop.f32.mrb[24].mxu0 }
 0x233   : > { %776 = vst [vmem:[%s3030_s22 + $0x60] sm:$0xff] %v609_v49  ;;  %v611_v50 = vpop.f32.mrb[25].mxu0 }
 0x234   : > { %v693_v51 = vpop.f32.mrb[14].mxu1  ;;  %777 = vst [vmem:[%s3030_s22 + $0x68] sm:$0xff] %v611_v50 }
 0x235   : > { %804 = vst [vmem:[%s3030_s22 + $0x140] sm:$0xff] %v693_v51  ;;  %v695_v52 = vpop.f32.mrb[15].mxu1 }
 0x236   : > { %805 = vst [vmem:[%s3030_s22 + $0x148] sm:$0xff] %v695_v52  ;;  %v615_v53 = vpop.f32.mrb[26].mxu0 }
 0x237   : > { %778 = vst [vmem:[%s3030_s22 + $0x70] sm:$0xff] %v615_v53  ;;  %v617_v54 = vpop.f32.mrb[27].mxu0 }
 0x238   : > { %v699_v55 = vpop.f32.mrb[16].mxu1  ;;  %779 = vst [vmem:[%s3030_s22 + $0x78] sm:$0xff] %v617_v54 }
 0x239   : > { %806 = vst [vmem:[%s3030_s22 + $0x150] sm:$0xff] %v699_v55  ;;  %v701_v56 = vpop.f32.mrb[17].mxu1 }
 0x23a   : > { %807 = vst [vmem:[%s3030_s22 + $0x158] sm:$0xff] %v701_v56  ;;  %v621_v57 = vpop.f32.mrb[28].mxu0 }
 0x23b   : > { %780 = vst [vmem:[%s3030_s22 + $0x80] sm:$0xff] %v621_v57  ;;  %v623_v58 = vpop.f32.mrb[29].mxu0 }
 0x23c   : > { %v705_v59 = vpop.f32.mrb[18].mxu1  ;;  %781 = vst [vmem:[%s3030_s22 + $0x88] sm:$0xff] %v623_v58 }
 0x23d   : > { %808 = vst [vmem:[%s3030_s22 + $0x160] sm:$0xff] %v705_v59  ;;  %v707_v60 = vpop.f32.mrb[19].mxu1 }
 0x23e   : > { %809 = vst [vmem:[%s3030_s22 + $0x168] sm:$0xff] %v707_v60  ;;  %v627_v61 = vpop.f32.mrb[30].mxu0 }
 0x23f   : > { %782 = vst [vmem:[%s3030_s22 + $0x90] sm:$0xff] %v627_v61  ;;  %v629_v62 = vpop.f32.mrb[31].mxu0 }
 0x240   : > { %v711_v63 = vpop.f32.mrb[20].mxu1  ;;  %783 = vst [vmem:[%s3030_s22 + $0x98] sm:$0xff] %v629_v62 }
 0x241   : > { %810 = vst [vmem:[%s3030_s22 + $0x170] sm:$0xff] %v711_v63  ;;  %v713_v1 = vpop.f32.mrb[21].mxu1 }
 0x242   : > { %811 = vst [vmem:[%s3030_s22 + $0x178] sm:$0xff] %v713_v1  ;;  %v633_v2 = vpop.f32.mrb[32].mxu0 }
 0x243   : > { %784 = vst [vmem:[%s3030_s22 + $0xa0] sm:$0xff] %v633_v2  ;;  %v635_v3 = vpop.f32.mrb[33].mxu0 }
 0x244   : > { %v717_v4 = vpop.f32.mrb[22].mxu1  ;;  %785 = vst [vmem:[%s3030_s22 + $0xa8] sm:$0xff] %v635_v3 }
 0x245   : > { %812 = vst [vmem:[%s3030_s22 + $0x180] sm:$0xff] %v717_v4  ;;  %v719_v5 = vpop.f32.mrb[23].mxu1 }
 0x246   : > { %813 = vst [vmem:[%s3030_s22 + $0x188] sm:$0xff] %v719_v5  ;;  %v639_v6 = vpop.f32.mrb[34].mxu0 }
 0x247   : > { %786 = vst [vmem:[%s3030_s22 + $0xb0] sm:$0xff] %v639_v6  ;;  %v641_v7 = vpop.f32.mrb[35].mxu0 }
 0x248   : > { %v723_v8 = vpop.f32.mrb[24].mxu1  ;;  %787 = vst [vmem:[%s3030_s22 + $0xb8] sm:$0xff] %v641_v7 }
 0x249   : > { %814 = vst [vmem:[%s3030_s22 + $0x190] sm:$0xff] %v723_v8  ;;  %v725_v9 = vpop.f32.mrb[25].mxu1 }
 0x24a   : > { %815 = vst [vmem:[%s3030_s22 + $0x198] sm:$0xff] %v725_v9  ;;  %v645_v10 = vpop.f32.mrb[36].mxu0 }
 0x24b   : > { %788 = vst [vmem:[%s3030_s22 + $0xc0] sm:$0xff] %v645_v10  ;;  %v647_v11 = vpop.f32.mrb[37].mxu0 }
 0x24c   : > { %v729_v12 = vpop.f32.mrb[26].mxu1  ;;  %789 = vst [vmem:[%s3030_s22 + $0xc8] sm:$0xff] %v647_v11 }
 0x24d   : > { %816 = vst [vmem:[%s3030_s22 + $0x1a0] sm:$0xff] %v729_v12  ;;  %v731_v13 = vpop.f32.mrb[27].mxu1 }
 0x24e   : > { %817 = vst [vmem:[%s3030_s22 + $0x1a8] sm:$0xff] %v731_v13  ;;  %v1030_v14 = vpop.f32.mrb[38].mxu0 }
 0x24f   : > { %1957 = vst [vmem:[%s3030_s22 + $0x200] sm:$0xff] %v1030_v14  ;;  %v1032_v15 = vpop.f32.mrb[39].mxu0 }
 0x250   : > { %v735_v16 = vpop.f32.mrb[28].mxu1  ;;  %1958 = vst [vmem:[%s3030_s22 + $0x208] sm:$0xff] %v1032_v15 }
 0x251   : > { %818 = vst [vmem:[%s3030_s22 + $0x1b0] sm:$0xff] %v735_v16  ;;  %v737_v17 = vpop.f32.mrb[29].mxu1 }
 0x252   : > { %819 = vst [vmem:[%s3030_s22 + $0x1b8] sm:$0xff] %v737_v17  ;;  %v1036_v18 = vpop.f32.mrb[40].mxu0 }
 0x253   : > { %1959 = vst [vmem:[%s3030_s22 + $0x210] sm:$0xff] %v1036_v18  ;;  %v1038_v19 = vpop.f32.mrb[41].mxu0 }
 0x254   : > { %v741_v20 = vpop.f32.mrb[30].mxu1  ;;  %1960 = vst [vmem:[%s3030_s22 + $0x218] sm:$0xff] %v1038_v19 }
 0x255   : > { %820 = vst [vmem:[%s3030_s22 + $0x1c0] sm:$0xff] %v741_v20  ;;  %v743_v21 = vpop.f32.mrb[31].mxu1 }
 0x256   : > { %821 = vst [vmem:[%s3030_s22 + $0x1c8] sm:$0xff] %v743_v21  ;;  %v1042_v22 = vpop.f32.mrb[42].mxu0 }
 0x257   : > { %1961 = vst [vmem:[%s3030_s22 + $0x220] sm:$0xff] %v1042_v22  ;;  %v1044_v23 = vpop.f32.mrb[43].mxu0 }
 0x258   : > { %v747_v24 = vpop.f32.mrb[32].mxu1  ;;  %1962 = vst [vmem:[%s3030_s22 + $0x228] sm:$0xff] %v1044_v23 }
 0x259   : > { %822 = vst [vmem:[%s3030_s22 + $0x1d0] sm:$0xff] %v747_v24  ;;  %v749_v25 = vpop.f32.mrb[33].mxu1 }
 0x25a   : > { %823 = vst [vmem:[%s3030_s22 + $0x1d8] sm:$0xff] %v749_v25  ;;  %v1048_v26 = vpop.f32.mrb[44].mxu0 }
 0x25b   : > { %1963 = vst [vmem:[%s3030_s22 + $0x230] sm:$0xff] %v1048_v26  ;;  %v1050_v0 = vpop.f32.mrb[45].mxu0 }
 0x25c   : > { %v753_v27 = vpop.f32.mrb[34].mxu1  ;;  %1964 = vst [vmem:[%s3030_s22 + $0x238] sm:$0xff] %v1050_v0 }
 0x25d   : > { %824 = vst [vmem:[%s3030_s22 + $0x1e0] sm:$0xff] %v753_v27  ;;  %v755_v28 = vpop.f32.mrb[35].mxu1 }
 0x25e   : > { %825 = vst [vmem:[%s3030_s22 + $0x1e8] sm:$0xff] %v755_v28  ;;  %v1054_v29 = vpop.f32.mrb[46].mxu0 }
 0x25f   : > { %1965 = vst [vmem:[%s3030_s22 + $0x240] sm:$0xff] %v1054_v29  ;;  %v1056_v30 = vpop.f32.mrb[47].mxu0 }
 0x260   : > { %v759_v31 = vpop.f32.mrb[36].mxu1  ;;  %1966 = vst [vmem:[%s3030_s22 + $0x248] sm:$0xff] %v1056_v30 }
 0x261   : > { %826 = vst [vmem:[%s3030_s22 + $0x1f0] sm:$0xff] %v759_v31  ;;  %v761_v32 = vpop.f32.mrb[37].mxu1 }
 0x262   : > { %827 = vst [vmem:[%s3030_s22 + $0x1f8] sm:$0xff] %v761_v32  ;;  %v1060_v33 = vpop.f32.mrb[48].mxu0 }
 0x263   : > { %1967 = vst [vmem:[%s3030_s22 + $0x250] sm:$0xff] %v1060_v33  ;;  %v1062_v34 = vpop.f32.mrb[49].mxu0 }
 0x264   : > { %v1488_v35 = vpop.f32.mrb[38].mxu1  ;;  %1968 = vst [vmem:[%s3030_s22 + $0x258] sm:$0xff] %v1062_v34 }
 0x265   : > { %2057 = vst [vmem:[%s3030_s22 + $0x400] sm:$0xff] %v1488_v35  ;;  %v1490_v36 = vpop.f32.mrb[39].mxu1 }
 0x266   : > { %2058 = vst [vmem:[%s3030_s22 + $0x408] sm:$0xff] %v1490_v36  ;;  %v1066_v37 = vpop.f32.mrb[50].mxu0 }
 0x267   : > { %1969 = vst [vmem:[%s3030_s22 + $0x260] sm:$0xff] %v1066_v37  ;;  %v1068_v38 = vpop.f32.mrb[51].mxu0 }
 0x268   : > { %v1494_v39 = vpop.f32.mrb[40].mxu1  ;;  %1970 = vst [vmem:[%s3030_s22 + $0x268] sm:$0xff] %v1068_v38 }
 0x269   : > { %2059 = vst [vmem:[%s3030_s22 + $0x410] sm:$0xff] %v1494_v39  ;;  %v1496_v40 = vpop.f32.mrb[41].mxu1 }
 0x26a   : > { %2060 = vst [vmem:[%s3030_s22 + $0x418] sm:$0xff] %v1496_v40  ;;  %v1072_v41 = vpop.f32.mrb[52].mxu0 }
 0x26b   : > { %1971 = vst [vmem:[%s3030_s22 + $0x270] sm:$0xff] %v1072_v41  ;;  %v1074_v42 = vpop.f32.mrb[53].mxu0 }
 0x26c   : > { %v1500_v43 = vpop.f32.mrb[42].mxu1  ;;  %1972 = vst [vmem:[%s3030_s22 + $0x278] sm:$0xff] %v1074_v42 }
 0x26d   : > { %2061 = vst [vmem:[%s3030_s22 + $0x420] sm:$0xff] %v1500_v43  ;;  %v1502_v44 = vpop.f32.mrb[43].mxu1 }
 0x26e   : > { %2062 = vst [vmem:[%s3030_s22 + $0x428] sm:$0xff] %v1502_v44  ;;  %v1078_v45 = vpop.f32.mrb[54].mxu0 }
 0x26f   : > { %1973 = vst [vmem:[%s3030_s22 + $0x280] sm:$0xff] %v1078_v45  ;;  %v1080_v46 = vpop.f32.mrb[55].mxu0 }
 0x270   : > { %v1506_v47 = vpop.f32.mrb[44].mxu1  ;;  %1974 = vst [vmem:[%s3030_s22 + $0x288] sm:$0xff] %v1080_v46 }
 0x271   : > { %2063 = vst [vmem:[%s3030_s22 + $0x430] sm:$0xff] %v1506_v47  ;;  %v1508_v48 = vpop.f32.mrb[45].mxu1 }
 0x272   : > { %2064 = vst [vmem:[%s3030_s22 + $0x438] sm:$0xff] %v1508_v48  ;;  %v1084_v49 = vpop.f32.mrb[56].mxu0 }
 0x273   : > { %1975 = vst [vmem:[%s3030_s22 + $0x290] sm:$0xff] %v1084_v49  ;;  %v1086_v50 = vpop.f32.mrb[57].mxu0 }
 0x274   : > { %v1512_v51 = vpop.f32.mrb[46].mxu1  ;;  %1976 = vst [vmem:[%s3030_s22 + $0x298] sm:$0xff] %v1086_v50 }
 0x275   : > { %2065 = vst [vmem:[%s3030_s22 + $0x440] sm:$0xff] %v1512_v51  ;;  %v1514_v52 = vpop.f32.mrb[47].mxu1 }
 0x276   : > { %2066 = vst [vmem:[%s3030_s22 + $0x448] sm:$0xff] %v1514_v52  ;;  %v1090_v53 = vpop.f32.mrb[58].mxu0 }
 0x277   : > { %1977 = vst [vmem:[%s3030_s22 + $0x2a0] sm:$0xff] %v1090_v53  ;;  %v1092_v54 = vpop.f32.mrb[59].mxu0 }
 0x278   : > { %v1518_v55 = vpop.f32.mrb[48].mxu1  ;;  %1978 = vst [vmem:[%s3030_s22 + $0x2a8] sm:$0xff] %v1092_v54 }
 0x279   : > { %2067 = vst [vmem:[%s3030_s22 + $0x450] sm:$0xff] %v1518_v55  ;;  %v1520_v56 = vpop.f32.mrb[49].mxu1 }
 0x27a   : > { %2068 = vst [vmem:[%s3030_s22 + $0x458] sm:$0xff] %v1520_v56  ;;  %v1096_v57 = vpop.f32.mrb[60].mxu0 }
 0x27b   : > { %1979 = vst [vmem:[%s3030_s22 + $0x2b0] sm:$0xff] %v1096_v57  ;;  %v1098_v58 = vpop.f32.mrb[61].mxu0 }
 0x27c   : > { %v1524_v59 = vpop.f32.mrb[50].mxu1  ;;  %1980 = vst [vmem:[%s3030_s22 + $0x2b8] sm:$0xff] %v1098_v58 }
 0x27d   : > { %2069 = vst [vmem:[%s3030_s22 + $0x460] sm:$0xff] %v1524_v59  ;;  %v1526_v60 = vpop.f32.mrb[51].mxu1 }
 0x27e   : > { %2070 = vst [vmem:[%s3030_s22 + $0x468] sm:$0xff] %v1526_v60  ;;  %v1102_v61 = vpop.f32.mrb[62].mxu0 }
 0x27f   : > { %1981 = vst [vmem:[%s3030_s22 + $0x2c0] sm:$0xff] %v1102_v61  ;;  %v1104_v62 = vpop.f32.mrb[63].mxu0 }
 0x280   : > { %v1530_v63 = vpop.f32.mrb[52].mxu1  ;;  %1982 = vst [vmem:[%s3030_s22 + $0x2c8] sm:$0xff] %v1104_v62 }
 0x281   : > { %2071 = vst [vmem:[%s3030_s22 + $0x470] sm:$0xff] %v1530_v63  ;;  %v1532_v1 = vpop.f32.mrb[53].mxu1 }
 0x282   : > { %2072 = vst [vmem:[%s3030_s22 + $0x478] sm:$0xff] %v1532_v1  ;;  %v1108_v2 = vpop.f32.mrb[64].mxu0 }
 0x283   : > { %1983 = vst [vmem:[%s3030_s22 + $0x2d0] sm:$0xff] %v1108_v2  ;;  %v1110_v3 = vpop.f32.mrb[65].mxu0 }
 0x284   : > { %v1536_v4 = vpop.f32.mrb[54].mxu1  ;;  %1984 = vst [vmem:[%s3030_s22 + $0x2d8] sm:$0xff] %v1110_v3 }
 0x285   : > { %2073 = vst [vmem:[%s3030_s22 + $0x480] sm:$0xff] %v1536_v4  ;;  %v1538_v5 = vpop.f32.mrb[55].mxu1 }
 0x286   : > { %2074 = vst [vmem:[%s3030_s22 + $0x488] sm:$0xff] %v1538_v5  ;;  %v1114_v6 = vpop.f32.mrb[66].mxu0 }
 0x287   : > { %1985 = vst [vmem:[%s3030_s22 + $0x2e0] sm:$0xff] %v1114_v6  ;;  %v1116_v7 = vpop.f32.mrb[67].mxu0 }
 0x288   : > { %v1542_v8 = vpop.f32.mrb[56].mxu1  ;;  %1986 = vst [vmem:[%s3030_s22 + $0x2e8] sm:$0xff] %v1116_v7 }
 0x289   : > { %2075 = vst [vmem:[%s3030_s22 + $0x490] sm:$0xff] %v1542_v8  ;;  %v1544_v9 = vpop.f32.mrb[57].mxu1 }
 0x28a   : > { %2076 = vst [vmem:[%s3030_s22 + $0x498] sm:$0xff] %v1544_v9  ;;  %v1120_v10 = vpop.f32.mrb[68].mxu0 }
 0x28b   : > { %1987 = vst [vmem:[%s3030_s22 + $0x2f0] sm:$0xff] %v1120_v10  ;;  %v1122_v11 = vpop.f32.mrb[69].mxu0 }
 0x28c   : > { %v1548_v12 = vpop.f32.mrb[58].mxu1  ;;  %1988 = vst [vmem:[%s3030_s22 + $0x2f8] sm:$0xff] %v1122_v11 }
 0x28d   : > { %2077 = vst [vmem:[%s3030_s22 + $0x4a0] sm:$0xff] %v1548_v12  ;;  %v1550_v13 = vpop.f32.mrb[59].mxu1 }
 0x28e   : > { %2078 = vst [vmem:[%s3030_s22 + $0x4a8] sm:$0xff] %v1550_v13  ;;  %v1126_v14 = vpop.f32.mrb[70].mxu0 }
 0x28f   : > { %1989 = vst [vmem:[%s3030_s22 + $0x300] sm:$0xff] %v1126_v14  ;;  %v1128_v15 = vpop.f32.mrb[71].mxu0 }
 0x290   : > { %v1554_v16 = vpop.f32.mrb[60].mxu1  ;;  %1990 = vst [vmem:[%s3030_s22 + $0x308] sm:$0xff] %v1128_v15 }
 0x291   : > { %2079 = vst [vmem:[%s3030_s22 + $0x4b0] sm:$0xff] %v1554_v16  ;;  %v1556_v17 = vpop.f32.mrb[61].mxu1 }
 0x292   : > { %2080 = vst [vmem:[%s3030_s22 + $0x4b8] sm:$0xff] %v1556_v17  ;;  %v1132_v18 = vpop.f32.mrb[72].mxu0 }
 0x293   : > { %1991 = vst [vmem:[%s3030_s22 + $0x310] sm:$0xff] %v1132_v18  ;;  %v1134_v19 = vpop.f32.mrb[73].mxu0 }
 0x294   : > { %v1560_v20 = vpop.f32.mrb[62].mxu1  ;;  %1992 = vst [vmem:[%s3030_s22 + $0x318] sm:$0xff] %v1134_v19 }
 0x295   : > { %2081 = vst [vmem:[%s3030_s22 + $0x4c0] sm:$0xff] %v1560_v20  ;;  %v1562_v21 = vpop.f32.mrb[63].mxu1 }
 0x296   : > { %2082 = vst [vmem:[%s3030_s22 + $0x4c8] sm:$0xff] %v1562_v21  ;;  %v1138_v22 = vpop.f32.mrb[74].mxu0 }
 0x297   : > { %1993 = vst [vmem:[%s3030_s22 + $0x320] sm:$0xff] %v1138_v22  ;;  %v1140_v23 = vpop.f32.mrb[75].mxu0 }
 0x298   : > { %v1566_v24 = vpop.f32.mrb[64].mxu1  ;;  %1994 = vst [vmem:[%s3030_s22 + $0x328] sm:$0xff] %v1140_v23 }
 0x299   : > { %2083 = vst [vmem:[%s3030_s22 + $0x4d0] sm:$0xff] %v1566_v24  ;;  %v1568_v25 = vpop.f32.mrb[65].mxu1 }
 0x29a   : > { %2084 = vst [vmem:[%s3030_s22 + $0x4d8] sm:$0xff] %v1568_v25  ;;  %v1144_v26 = vpop.f32.mrb[76].mxu0 }
 0x29b   : > { %1995 = vst [vmem:[%s3030_s22 + $0x330] sm:$0xff] %v1144_v26  ;;  %v1146_v0 = vpop.f32.mrb[77].mxu0 }
 0x29c   : > { %v1572_v27 = vpop.f32.mrb[66].mxu1  ;;  %1996 = vst [vmem:[%s3030_s22 + $0x338] sm:$0xff] %v1146_v0 }
 0x29d   : > { %2085 = vst [vmem:[%s3030_s22 + $0x4e0] sm:$0xff] %v1572_v27  ;;  %v1574_v28 = vpop.f32.mrb[67].mxu1 }
 0x29e   : > { %2086 = vst [vmem:[%s3030_s22 + $0x4e8] sm:$0xff] %v1574_v28  ;;  %v1150_v29 = vpop.f32.mrb[78].mxu0 }
 0x29f   : > { %1997 = vst [vmem:[%s3030_s22 + $0x340] sm:$0xff] %v1150_v29  ;;  %v1152_v30 = vpop.f32.mrb[79].mxu0 }
 0x2a0   : > { %v1578_v31 = vpop.f32.mrb[68].mxu1  ;;  %1998 = vst [vmem:[%s3030_s22 + $0x348] sm:$0xff] %v1152_v30 }
 0x2a1   : > { %2087 = vst [vmem:[%s3030_s22 + $0x4f0] sm:$0xff] %v1578_v31  ;;  %v1580_v32 = vpop.f32.mrb[69].mxu1 }
 0x2a2   : > { %2088 = vst [vmem:[%s3030_s22 + $0x4f8] sm:$0xff] %v1580_v32  ;;  %v1156_v33 = vpop.f32.mrb[80].mxu0 }
 0x2a3   : > { %1999 = vst [vmem:[%s3030_s22 + $0x350] sm:$0xff] %v1156_v33  ;;  %v1158_v34 = vpop.f32.mrb[81].mxu0 }
 0x2a4   : > { %v1584_v35 = vpop.f32.mrb[70].mxu1  ;;  %2000 = vst [vmem:[%s3030_s22 + $0x358] sm:$0xff] %v1158_v34 }
 0x2a5   : > { %2089 = vst [vmem:[%s3030_s22 + $0x500] sm:$0xff] %v1584_v35  ;;  %v1586_v36 = vpop.f32.mrb[71].mxu1 }
 0x2a6   : > { %2090 = vst [vmem:[%s3030_s22 + $0x508] sm:$0xff] %v1586_v36  ;;  %v1162_v37 = vpop.f32.mrb[82].mxu0 }
 0x2a7   : > { %2001 = vst [vmem:[%s3030_s22 + $0x360] sm:$0xff] %v1162_v37  ;;  %v1164_v38 = vpop.f32.mrb[83].mxu0 }
 0x2a8   : > { %v1590_v39 = vpop.f32.mrb[72].mxu1  ;;  %2002 = vst [vmem:[%s3030_s22 + $0x368] sm:$0xff] %v1164_v38 }
 0x2a9   : > { %2091 = vst [vmem:[%s3030_s22 + $0x510] sm:$0xff] %v1590_v39  ;;  %v1592_v40 = vpop.f32.mrb[73].mxu1 }
 0x2aa   : > { %2092 = vst [vmem:[%s3030_s22 + $0x518] sm:$0xff] %v1592_v40  ;;  %v1168_v41 = vpop.f32.mrb[84].mxu0 }
 0x2ab   : > { %2003 = vst [vmem:[%s3030_s22 + $0x370] sm:$0xff] %v1168_v41  ;;  %v1170_v42 = vpop.f32.mrb[85].mxu0 }
 0x2ac   : > { %v1596_v43 = vpop.f32.mrb[74].mxu1  ;;  %2004 = vst [vmem:[%s3030_s22 + $0x378] sm:$0xff] %v1170_v42 }
 0x2ad   : > { %2093 = vst [vmem:[%s3030_s22 + $0x520] sm:$0xff] %v1596_v43  ;;  %v1598_v44 = vpop.f32.mrb[75].mxu1 }
 0x2ae   : > { %2094 = vst [vmem:[%s3030_s22 + $0x528] sm:$0xff] %v1598_v44  ;;  %v1174_v45 = vpop.f32.mrb[86].mxu0 }
 0x2af   : > { %2005 = vst [vmem:[%s3030_s22 + $0x380] sm:$0xff] %v1174_v45  ;;  %v1176_v46 = vpop.f32.mrb[87].mxu0 }
 0x2b0   : > { %v1602_v47 = vpop.f32.mrb[76].mxu1  ;;  %2006 = vst [vmem:[%s3030_s22 + $0x388] sm:$0xff] %v1176_v46 }
 0x2b1   : > { %2095 = vst [vmem:[%s3030_s22 + $0x530] sm:$0xff] %v1602_v47  ;;  %v1604_v48 = vpop.f32.mrb[77].mxu1 }
 0x2b2   : > { %2096 = vst [vmem:[%s3030_s22 + $0x538] sm:$0xff] %v1604_v48  ;;  %v1180_v49 = vpop.f32.mrb[88].mxu0 }
 0x2b3   : > { %2007 = vst [vmem:[%s3030_s22 + $0x390] sm:$0xff] %v1180_v49  ;;  %v1182_v50 = vpop.f32.mrb[89].mxu0 }
 0x2b4   : > { %v1608_v51 = vpop.f32.mrb[78].mxu1  ;;  %2008 = vst [vmem:[%s3030_s22 + $0x398] sm:$0xff] %v1182_v50 }
 0x2b5   : > { %2097 = vst [vmem:[%s3030_s22 + $0x540] sm:$0xff] %v1608_v51  ;;  %v1610_v52 = vpop.f32.mrb[79].mxu1 }
 0x2b6   : > { %2098 = vst [vmem:[%s3030_s22 + $0x548] sm:$0xff] %v1610_v52  ;;  %v1186_v53 = vpop.f32.mrb[90].mxu0 }
 0x2b7   : > { %2009 = vst [vmem:[%s3030_s22 + $0x3a0] sm:$0xff] %v1186_v53  ;;  %v1188_v54 = vpop.f32.mrb[91].mxu0 }
 0x2b8   : > { %v1614_v55 = vpop.f32.mrb[80].mxu1  ;;  %2010 = vst [vmem:[%s3030_s22 + $0x3a8] sm:$0xff] %v1188_v54 }
 0x2b9   : > { %2099 = vst [vmem:[%s3030_s22 + $0x550] sm:$0xff] %v1614_v55  ;;  %v1616_v56 = vpop.f32.mrb[81].mxu1 }
 0x2ba   : > { %2100 = vst [vmem:[%s3030_s22 + $0x558] sm:$0xff] %v1616_v56  ;;  %v1192_v57 = vpop.f32.mrb[92].mxu0 }
 0x2bb   : > { %2011 = vst [vmem:[%s3030_s22 + $0x3b0] sm:$0xff] %v1192_v57  ;;  %v1194_v58 = vpop.f32.mrb[93].mxu0 }
 0x2bc   : > { %v1620_v59 = vpop.f32.mrb[82].mxu1  ;;  %2012 = vst [vmem:[%s3030_s22 + $0x3b8] sm:$0xff] %v1194_v58 }
 0x2bd   : > { %2101 = vst [vmem:[%s3030_s22 + $0x560] sm:$0xff] %v1620_v59  ;;  %v1622_v60 = vpop.f32.mrb[83].mxu1 }
 0x2be   : > { %2102 = vst [vmem:[%s3030_s22 + $0x568] sm:$0xff] %v1622_v60  ;;  %v1198_v61 = vpop.f32.mrb[94].mxu0 }
 0x2bf   : > { %2013 = vst [vmem:[%s3030_s22 + $0x3c0] sm:$0xff] %v1198_v61  ;;  %v1200_v62 = vpop.f32.mrb[95].mxu0 }
 0x2c0   : > { %v1626_v63 = vpop.f32.mrb[84].mxu1  ;;  %2014 = vst [vmem:[%s3030_s22 + $0x3c8] sm:$0xff] %v1200_v62 }
 0x2c1   : > { %2103 = vst [vmem:[%s3030_s22 + $0x570] sm:$0xff] %v1626_v63  ;;  %v1628_v1 = vpop.f32.mrb[85].mxu1 }
 0x2c2   : > { %2104 = vst [vmem:[%s3030_s22 + $0x578] sm:$0xff] %v1628_v1  ;;  %v1204_v2 = vpop.f32.mrb[96].mxu0 }
 0x2c3   : > { %2015 = vst [vmem:[%s3030_s22 + $0x3d0] sm:$0xff] %v1204_v2  ;;  %v1206_v3 = vpop.f32.mrb[97].mxu0 }
 0x2c4   : > { %v1632_v4 = vpop.f32.mrb[86].mxu1  ;;  %2016 = vst [vmem:[%s3030_s22 + $0x3d8] sm:$0xff] %v1206_v3 }
 0x2c5   : > { %2105 = vst [vmem:[%s3030_s22 + $0x580] sm:$0xff] %v1632_v4  ;;  %v1634_v5 = vpop.f32.mrb[87].mxu1 }
 0x2c6   : > { %2106 = vst [vmem:[%s3030_s22 + $0x588] sm:$0xff] %v1634_v5  ;;  %v1210_v6 = vpop.f32.mrb[98].mxu0 }
 0x2c7   : > { %2017 = vst [vmem:[%s3030_s22 + $0x3e0] sm:$0xff] %v1210_v6  ;;  %v1212_v7 = vpop.f32.mrb[99].mxu0 }
 0x2c8   : > { %v1638_v8 = vpop.f32.mrb[88].mxu1  ;;  %2018 = vst [vmem:[%s3030_s22 + $0x3e8] sm:$0xff] %v1212_v7 }
 0x2c9   : > { %2107 = vst [vmem:[%s3030_s22 + $0x590] sm:$0xff] %v1638_v8  ;;  %v1640_v9 = vpop.f32.mrb[89].mxu1 }
 0x2ca   : > { %2108 = vst [vmem:[%s3030_s22 + $0x598] sm:$0xff] %v1640_v9  ;;  %v1216_v10 = vpop.f32.mrb[100].mxu0 }
 0x2cb   : > { %2019 = vst [vmem:[%s3030_s22 + $0x3f0] sm:$0xff] %v1216_v10  ;;  %v1218_v11 = vpop.f32.mrb[101].mxu0 }
 0x2cc   : > { %v1644_v12 = vpop.f32.mrb[90].mxu1  ;;  %2020 = vst [vmem:[%s3030_s22 + $0x3f8] sm:$0xff] %v1218_v11 }
 0x2cd   : > { %2109 = vst [vmem:[%s3030_s22 + $0x5a0] sm:$0xff] %v1644_v12  ;;  %v1646_v13 = vpop.f32.mrb[91].mxu1 }
 0x2ce   : > { %2110 = vst [vmem:[%s3030_s22 + $0x5a8] sm:$0xff] %v1646_v13 }
 0x2d0   : > { %v1650_v14 = vpop.f32.mrb[92].mxu1 }
 0x2d1   : > { %2111 = vst [vmem:[%s3030_s22 + $0x5b0] sm:$0xff] %v1650_v14  ;;  %v1652_v15 = vpop.f32.mrb[93].mxu1 }
 0x2d2   : > { %2112 = vst [vmem:[%s3030_s22 + $0x5b8] sm:$0xff] %v1652_v15 }
 0x2d4   : > { %v1656_v16 = vpop.f32.mrb[94].mxu1 }
 0x2d5   : > { %2113 = vst [vmem:[%s3030_s22 + $0x5c0] sm:$0xff] %v1656_v16  ;;  %v1658_v17 = vpop.f32.mrb[95].mxu1 }
 0x2d6   : > { %2114 = vst [vmem:[%s3030_s22 + $0x5c8] sm:$0xff] %v1658_v17 }
 0x2d8   : > { %v1662_v18 = vpop.f32.mrb[96].mxu1 }
 0x2d9   : > { %2115 = vst [vmem:[%s3030_s22 + $0x5d0] sm:$0xff] %v1662_v18  ;;  %v1664_v19 = vpop.f32.mrb[97].mxu1 }
 0x2da   : > { %2116 = vst [vmem:[%s3030_s22 + $0x5d8] sm:$0xff] %v1664_v19 }
 0x2dc   : > { %v1668_v20 = vpop.f32.mrb[98].mxu1 }
 0x2dd   : > { %2117 = vst [vmem:[%s3030_s22 + $0x5e0] sm:$0xff] %v1668_v20  ;;  %v1670_v21 = vpop.f32.mrb[99].mxu1 }
 0x2de   : > { %2118 = vst [vmem:[%s3030_s22 + $0x5e8] sm:$0xff] %v1670_v21 }
 0x2e0   : > { %v1674_v22 = vpop.f32.mrb[100].mxu1 }
 0x2e1   : > { %2119 = vst [vmem:[%s3030_s22 + $0x5f0] sm:$0xff] %v1674_v22  ;;  %v1676_v23 = vpop.f32.mrb[101].mxu1 }
 0x2e2   : > { %2120 = vst [vmem:[%s3030_s22 + $0x5f8] sm:$0xff] %v1676_v23 }
 0x2e3   : > { %2298 = shalt.err (!%p2295_p5)
}
 0x2e4   : > { %s2299_s18 = scalar_lea.hbm %s3227_s11, 24576  ;;  %s2303_s4 = scalar_lea.hbm %s3283_s3, 49152 }
 0x2e5   : > { %p2300_p9 = scmp.ne.s32.totalorder %s3227_s11, %s2299_s18  ;;  %p2304_p3 = scmp.lt.u32.totalorder %s3227_s11, %s3283_s3 }
 0x2e6   : > { %p2305_p7 = scmp.lt.u32.totalorder %s2303_s4, %s2299_s18  ;;  %p2307_p4 = scmp.lt.u32.totalorder %s2299_s18, %s3227_s11 }
 0x2e7   : > { %p2301_p1 = pnand %p2300_p9, %p2495_p10 }
 0x2e8   : > { %p2306_p11 = por %p2305_p7, %p2304_p3 }
 0x2e9   : > { %p2302_p2 = pneg %p2301_p1 }
 0x2ea   : > { %p2308_p6 = por %p2307_p4, %p2306_p11 }
 0x2ec   : > { %p2309_p8 = pnand %p2308_p6, %p2302_p2 }
 0x2ee   : > { %2312 = shalt.err (!%p2309_p8)
}
 0x2ef   : > { %s2381_s22 = smov 256   ;;  %s2382_s24 = smov 16  }
 0x2f0   : > { %2153 = dma.vmem_to_hbm [thread:$0]  (%p2495_p10), %s3229_s7, 24576, %s3227_s11, %s1745_s15, %s2381_s22, %s2381_s22, %s2382_s24  }
 0x2f1 PF: > { %s1776_s8 = sand.u32 1, %s2351_s12   ;;  %p3300_p12 = scmp.ne.s32.totalorder %s3291_s23, 0 }
 0x2f2   : > { %p3301_p13 = scmp.ge.s32.totalorder %s2371_s17, 2  ;;  %s1777_s10 = scalar_lea.sflag [#allocation4], %s1776_s8 }
 0x2f4   : > { %p2164_p0 = pnand %p3301_p13, %p3300_p12 }
 0x2f6   : > { %2346 = dma.done.wait (!%p2164_p0), %s1777_s10, 24576  }
 0x2f7   : > { %2348 = vsyncadd (!%p2164_p0), %s1777_s10, 4294942720  ;;  %s20_s17 = sadd.s32 1, %s2371_s17   ;;  %s3302_s12 = smov %s2355_s13 }
 0x2f8   : > { %p17_p5 = scmp.ge.s32.totalorder %s20_s17, 4   ;;  %s3303_s13 = smov %s2359_s14 }
 0x2f9   : > { %s3304_s14 = smov %s2504_s5  ;;  %s3305_s15 = smov %s2367_s16 }
 0x2fa   : > { %s3306_s16 = smov %s3308_s28  ;;  %19 = sbr.rel (!%p17_p5) target bundleno = 7 (0x7), region = 86 }
 0x301   :  { %1782 = vsyncpa [#allocation3], 1 }
 0x302   :  { %1784 = vsyncpa [#allocation3 + $0x1], 1 }
 0x303   :  { %1785 = vsyncpa [#allocation6], 1 }
 0x304   :  { %1786 = vsyncpa [#allocation4], 1 }
 0x305   :  { %1788 = vsyncpa [#allocation4 + $0x1], 1 }

</bundles_post_ra>
